<compile_context>
chip_gen: v6e
topology: v6e:2x2x1
jax: 0.10.0
libtpu: 0.0.40
codegen_flags: <defaults>
</compile_context>

<pallas_src>
import jax
import jax.numpy as jnp
from jax import lax
from jax.experimental import pallas as pl
from jax.experimental.pallas import tpu as pltpu

PAD = 4                  # max dilation
DILATIONS = (1, 2, 4)


def _round_up(x, m):
    return -(-x // m) * m


def _fold_params(params, matmul_dtype):
    """Fold the 1x1 output conv + all biases into per-tap effective weights.

    Returns (offsets, W_aug):
      offsets : tuple of unique (dy, dx) spatial tap offsets (25 of them)
      W_aug   : (Cout, n_taps*C + 1); column t*C + c is the effective weight of tap t /
                input channel c; the last column is the folded bias (matched by a
                ones-row in the tap matrix).
    """
    w1, b1, w2, b2, w3, b3, wo, bo = params
    C = w1.shape[2]
    folded = {}
    for j, (w, d) in enumerate(zip((w1, w2, w3), DILATIONS)):
        wo_j = wo[j * C:(j + 1) * C]                       # (C, Cout)
        for ky in range(3):
            for kx in range(3):
                o = ((ky - 1) * d, (kx - 1) * d)
                w_eff = w[ky, kx] @ wo_j                   # (C_in, Cout)
                folded[o] = folded.get(o, 0) + w_eff
    offsets = tuple(folded.keys())
    W_big = jnp.concatenate([folded[o].T for o in offsets], axis=1)          # (Cout, K)
    b_eff = (b1 @ wo[0:C] + b2 @ wo[C:2 * C] + b3 @ wo[2 * C:3 * C] + bo).T  # (Cout, 1)
    W_aug = jnp.concatenate([W_big, b_eff], axis=1)                          # (Cout, K+1)
    return offsets, W_aug.astype(matmul_dtype)


def _make_kernel(offsets, H, W, C, nb, OFF, L_pad, matmul_dtype):
    HW = H * W
    COLS = nb * L_pad
    n_taps = len(offsets)
    # taps per store group so every scratch store covers >= 8 sublanes when C < 8
    gs = max(1, -(-8 // C)) if C < 8 else 1

    def kernel(x_ref, w_ref, o_ref, stage_ref, taps_ref):
        # x_ref    : (nb, C, H*W)            unpadded input block
        # w_ref    : (Cout, K+1)             folded tap weights + bias column
        # o_ref    : (nb, Cout, H*W)         lane-dense output block
        # stage_ref: (C, nb*L_pad + L_pad)   flat zero-padded staging buffer (x dtype)
        # taps_ref : (K+1, nb*L_pad)         im2col matrix (matmul dtype)

        # ---- in-kernel padding: zero the stage, drop each image interior in -------
        # (zeroed every step on purpose: with "parallel" megacore sharding a
        #  program_id==0 one-time init would never run on the second core)
        stage_ref[...] = jnp.zeros_like(stage_ref)
        for n in range(nb):
            base = n * L_pad + OFF                       # lane-aligned interior start
            stage_ref[:, base:base + HW] = x_ref[n]

        # ---- per-dx border masks: source column w+dx must stay inside [0, W) ------
        qcol = lax.broadcasted_iota(jnp.int32, (1, COLS), 1)
        col_w = (qcol % L_pad) % W
        dx_masks = {
            dx: (col_w + dx >= 0) & (col_w + dx < W)
            for dx in sorted({ox for _, ox in offsets}) if dx != 0
        }

        def tap_slab(t):
            dy, dx = offsets[t]
            s = OFF + dy * W + dx                        # static flat shift
            slab = stage_ref[:, s:s + COLS]              # one lane-shifted slice, all imgs
            if dx != 0:
                slab = jnp.where(dx_masks[dx], slab, 0)  # zero wrapped columns
            return slab.astype(matmul_dtype)

        # ---- im2col: grouped stores (>= 8 sublanes per store for small C) ---------
        t = 0
        while t < n_taps:
            hi = min(t + gs, n_taps)
            parts = [tap_slab(i) for i in range(t, hi)]
            slab = parts[0] if len(parts) == 1 else jnp.concatenate(parts, axis=0)
            taps_ref[t * C:hi * C, :] = slab
            t = hi
        # bias row (multiplies the folded-bias weight column)
        taps_ref[n_taps * C:n_taps * C + 1, :] = jnp.ones((1, COLS), matmul_dtype)

        # ---- one MXU contraction over (tap, channel) + bias row, f32 accumulate ---
        out = jnp.dot(w_ref[...], taps_ref[...],
                      preferred_element_type=jnp.float32)        # (Cout, COLS)

        # ---- lane-aligned per-image stores: (Cout, H*W) full-width -----------------
        for n in range(nb):
            o_ref[n] = out[:, n * L_pad:n * L_pad + HW].astype(o_ref.dtype)

    return kernel


def stacked_atrous_conv(x_nchw, params, *, matmul_dtype=jnp.bfloat16,
                        batch_block=None):
    """Forward pass equivalent to StackedAtrousConv.forward (NCHW in / NCHW out)."""
    N, C, H, W = x_nchw.shape
    Cout = params[6].shape[-1]
    HW = H * W
    offsets, W_aug = _fold_params(params, matmul_dtype)
    K = len(offsets) * C

    # Flat per-image geometry: each image becomes a zero-padded flat row of length
    # L_pad; tap (dy, dx) is then the slice starting at OFF + dy*W + dx.
    reach = PAD * W + PAD                       # furthest tap shift in flat coords
    OFF = _round_up(reach, W)                   # interior start (multiple of W)
    if 128 % W == 0:
        OFF = _round_up(OFF, 128)               # lane-align the interior writes
    L_pad = _round_up(OFF + HW + reach, 128)    # lane-aligned per-image block length

    # Images per grid step: make the matmul RHS >= ~1024 lanes (review item 1).
    # NOTE(v7x): for large N prefer keeping >= 2 "parallel" grid steps so both
    # TensorCores are used; on single-TC v5e/v6e fewer, larger steps win.
    if batch_block is None:
        batch_block = min(N, max(1, -(-1024 // L_pad)))
    while N % batch_block:
        batch_block -= 1
    nb = batch_block
    COLS = nb * L_pad

    # VMEM budget: stage (C, COLS+L_pad) in x.dtype + taps (K+1, COLS) in matmul dtype
    # + I/O blocks — well under 1 MiB here.  For production sizes tile H*W / nb so the
    # taps matrix stays within the per-generation scoped VMEM (v7x: 64 MiB total) and
    # set vmem_limit_bytes explicitly via CompilerParams.

    kernel = _make_kernel(offsets, H, W, C, nb, OFF, L_pad, matmul_dtype)

    x_flat = x_nchw.reshape(N, C, HW)           # contiguous -> free, no extra HBM pass
    out_flat = pl.pallas_call(
        kernel,
        out_shape=jax.ShapeDtypeStruct((N, Cout, HW), x_nchw.dtype),
        grid=(N // nb,),
        in_specs=[
            pl.BlockSpec((nb, C, HW), lambda g: (g, 0, 0)),     # batched input block
            pl.BlockSpec((Cout, K + 1), lambda g: (0, 0)),      # folded weights + bias
        ],
        out_specs=pl.BlockSpec((nb, Cout, HW), lambda g: (g, 0, 0)),
        scratch_shapes=[
            pltpu.VMEM((C, COLS + L_pad), x_nchw.dtype),        # flat padded stage
            pltpu.VMEM((K + 1, COLS), matmul_dtype),            # im2col matrix
        ],
        compiler_params=pltpu.CompilerParams(
            dimension_semantics=("parallel",)),
    )(x_flat, W_aug)

    return out_flat.reshape(N, Cout, H, W)      # contiguous reshape; already NCHW


def init_params(key, in_channels, out_channels):
    """Deterministic synthetic parameters (shapes mirror the PyTorch module)."""
    ks = jax.random.split(key, 8)
    C, Co = in_channels, out_channels
    w1 = 0.1 * jax.random.normal(ks[0], (3, 3, C, C), jnp.float32)   # HWIO, dilation 1
    w2 = 0.1 * jax.random.normal(ks[1], (3, 3, C, C), jnp.float32)   # dilation 2
    w3 = 0.1 * jax.random.normal(ks[2], (3, 3, C, C), jnp.float32)   # dilation 4
    b1 = 0.1 * jax.random.normal(ks[3], (1, C), jnp.float32)
    b2 = 0.1 * jax.random.normal(ks[4], (1, C), jnp.float32)
    b3 = 0.1 * jax.random.normal(ks[5], (1, C), jnp.float32)
    wo = 0.1 * jax.random.normal(ks[6], (3 * C, Co), jnp.float32)    # 1x1 conv as matmul
    bo = 0.1 * jax.random.normal(ks[7], (1, Co), jnp.float32)
    return (w1, b1, w2, b2, w3, b3, wo, bo)


def reference_forward(x_nchw, params):
    """Pure-JAX reference (lax.conv_general_dilated) matching the PyTorch forward."""
    w1, b1, w2, b2, w3, b3, wo, bo = params
    x = jnp.transpose(x_nchw, (0, 2, 3, 1))
    dn = ('NHWC', 'HWIO', 'NHWC')
    outs = []
    for w, b, d in ((w1, b1, 1), (w2, b2, 2), (w3, b3, 4)):
        y = jax.lax.conv_general_dilated(
            x, w, window_strides=(1, 1), padding=[(d, d), (d, d)],
            rhs_dilation=(d, d), dimension_numbers=dn) + b
        outs.append(y)
    cat = jnp.concatenate(outs, axis=-1)
    out = jnp.einsum('nhwc,cd->nhwd', cat, wo) + bo
    return jnp.transpose(out, (0, 3, 1, 2))


if __name__ == "__main__":
    key = jax.random.PRNGKey(0)
    k_x, k_p = jax.random.split(key)

    N, C_in, H, W = 2, 4, 16, 16
    C_out = 8

    x = jax.random.normal(k_x, (N, C_in, H, W), jnp.float32)   # NCHW like PyTorch
    params = init_params(k_p, C_in, C_out)

    ref = reference_forward(x, params)

    # f32 matmul path -- tight numerical check against the lax reference.
    out_f32 = jax.block_until_ready(
        stacked_atrous_conv(x, params, matmul_dtype=jnp.float32))
    assert out_f32.shape == (N, C_out, H, W), out_f32.shape
    assert jnp.allclose(out_f32, ref, atol=1e-4, rtol=1e-4), \
        float(jnp.max(jnp.abs(out_f32 - ref)))

    # Default bf16-MXU path (f32 accumulation) -- tolerance set for bf16 operands.
    out_bf16 = jax.block_until_ready(stacked_atrous_conv(x, params))
    assert out_bf16.shape == (N, C_out, H, W), out_bf16.shape
    assert jnp.allclose(out_bf16, ref, atol=3e-2, rtol=3e-2), \
        float(jnp.max(jnp.abs(out_bf16 - ref)))

    print("KERNEL_OK")
</pallas_src>

<mosaic_0001>
module attributes {stable_mosaic.version = 11 : i64} {
  func.func @kernel(%arg0: i32, %arg1: memref<2x4x256xf32, #tpu.memory_space<vmem>>, %arg2: memref<8x101xf32, #tpu.memory_space<vmem>>, %arg3: memref<2x8x256xf32, #tpu.memory_space<vmem>>, %arg4: memref<4x1536xf32, #tpu.memory_space<vmem>>, %arg5: memref<101x1024xf32, #tpu.memory_space<vmem>>) attributes {dimension_semantics = [#tpu.dimension_semantics<parallel>], iteration_bounds = array<i64: 1>, scalar_prefetch = 0 : i64, scratch_operands = 2 : i64, tpu.core_type = #tpu.core_type<tc>, window_params = [{transform_indices = @transform_0, window_bounds = array<i64: 2, 4, 256>}, {pipeline_mode = #tpu.pipeline_mode<synchronous>, transform_indices = @transform_1, window_bounds = array<i64: 8, 101>}, {transform_indices = @transform_2, window_bounds = array<i64: 2, 8, 256>}]} {
    %cst = arith.constant 0.000000e+00 : f32
    %0 = vector.broadcast %cst : f32 to vector<4x1536xf32>
    %c0 = arith.constant 0 : index
    %c0_0 = arith.constant 0 : index
    %1 = vector.load %arg4[%c0, %c0_0] : memref<4x1536xf32, #tpu.memory_space<vmem>>, vector<4x1536xf32>
    tpu.vector_store %arg4[%c0, %c0_0], %0 {strides = array<i32>} : memref<4x1536xf32, #tpu.memory_space<vmem>>, vector<4x1536xf32>,
    %c0_1 = arith.constant 0 : index
    %c0_2 = arith.constant 0 : index
    %c0_3 = arith.constant 0 : index
    %2 = vector.load %arg1[%c0_1, %c0_2, %c0_3] : memref<2x4x256xf32, #tpu.memory_space<vmem>>, vector<1x4x256xf32>
    %3 = vector.shape_cast %2 : vector<1x4x256xf32> to vector<4x256xf32>
    %c0_4 = arith.constant 0 : index
    %c128 = arith.constant 128 : index
    %4 = vector.load %arg4[%c0_4, %c128] : memref<4x1536xf32, #tpu.memory_space<vmem>>, vector<4x256xf32>
    tpu.vector_store %arg4[%c0_4, %c128], %3 {strides = array<i32>} : memref<4x1536xf32, #tpu.memory_space<vmem>>, vector<4x256xf32>,
    %c1 = arith.constant 1 : index
    %c0_5 = arith.constant 0 : index
    %c0_6 = arith.constant 0 : index
    %5 = vector.load %arg1[%c1, %c0_5, %c0_6] : memref<2x4x256xf32, #tpu.memory_space<vmem>>, vector<1x4x256xf32>
    %6 = vector.shape_cast %5 : vector<1x4x256xf32> to vector<4x256xf32>
    %c0_7 = arith.constant 0 : index
    %c640 = arith.constant 640 : index
    %7 = vector.load %arg4[%c0_7, %c640] : memref<4x1536xf32, #tpu.memory_space<vmem>>, vector<4x256xf32>
    tpu.vector_store %arg4[%c0_7, %c640], %6 {strides = array<i32>} : memref<4x1536xf32, #tpu.memory_space<vmem>>, vector<4x256xf32>,
    %8 = tpu.iota {dimensions = array<i32: 1>} : vector<1x1024xi32>
    %c512_i32 = arith.constant 512 : i32
    %c0_i32 = arith.constant 0 : i32
    %9 = arith.cmpi eq, %c512_i32, %c0_i32 : i32
    %c1_i32 = arith.constant 1 : i32
    %10 = arith.select %9, %c1_i32, %c512_i32 : i32
    %11 = vector.broadcast %10 : i32 to vector<1x1024xi32>
    %12 = arith.remsi %8, %11 : vector<1x1024xi32>
    %c0_i32_8 = arith.constant 0 : i32
    %13 = vector.broadcast %c0_i32_8 : i32 to vector<1x1024xi32>
    %14 = arith.cmpi ne, %12, %13 : vector<1x1024xi32>
    %c0_i32_9 = arith.constant 0 : i32
    %15 = vector.broadcast %c0_i32_9 : i32 to vector<1x1024xi32>
    %16 = arith.cmpi slt, %12, %15 : vector<1x1024xi32>
    %c0_i32_10 = arith.constant 0 : i32
    %17 = arith.cmpi slt, %10, %c0_i32_10 : i32
    %18 = vector.broadcast %17 : i1 to vector<1x1024xi1>
    %19 = vector.broadcast %18 : vector<1x1024xi1> to vector<1x1024xi1>
    %20 = arith.xori %16, %19 : vector<1x1024xi1>
    %21 = arith.andi %20, %14 : vector<1x1024xi1>
    %22 = vector.broadcast %10 : i32 to vector<1x1024xi32>
    %23 = arith.addi %12, %22 : vector<1x1024xi32>
    %24 = arith.select %21, %23, %12 : vector<1x1024xi1>, vector<1x1024xi32>
    %c16_i32 = arith.constant 16 : i32
    %c0_i32_11 = arith.constant 0 : i32
    %25 = arith.cmpi eq, %c16_i32, %c0_i32_11 : i32
    %c1_i32_12 = arith.constant 1 : i32
    %26 = arith.select %25, %c1_i32_12, %c16_i32 : i32
    %27 = vector.broadcast %26 : i32 to vector<1x1024xi32>
    %28 = arith.remsi %24, %27 : vector<1x1024xi32>
    %c0_i32_13 = arith.constant 0 : i32
    %29 = vector.broadcast %c0_i32_13 : i32 to vector<1x1024xi32>
    %30 = arith.cmpi ne, %28, %29 : vector<1x1024xi32>
    %c0_i32_14 = arith.constant 0 : i32
    %31 = vector.broadcast %c0_i32_14 : i32 to vector<1x1024xi32>
    %32 = arith.cmpi slt, %28, %31 : vector<1x1024xi32>
    %c0_i32_15 = arith.constant 0 : i32
    %33 = arith.cmpi slt, %26, %c0_i32_15 : i32
    %34 = vector.broadcast %33 : i1 to vector<1x1024xi1>
    %35 = vector.broadcast %34 : vector<1x1024xi1> to vector<1x1024xi1>
    %36 = arith.xori %32, %35 : vector<1x1024xi1>
    %37 = arith.andi %36, %30 : vector<1x1024xi1>
    %38 = vector.broadcast %26 : i32 to vector<1x1024xi32>
    %39 = arith.addi %28, %38 : vector<1x1024xi32>
    %40 = arith.select %37, %39, %28 : vector<1x1024xi1>, vector<1x1024xi32>
    %c-4_i32 = arith.constant -4 : i32
    %41 = vector.broadcast %c-4_i32 : i32 to vector<1x1024xi32>
    %42 = arith.addi %40, %41 : vector<1x1024xi32>
    %c0_i32_16 = arith.constant 0 : i32
    %43 = vector.broadcast %c0_i32_16 : i32 to vector<1x1024xi32>
    %44 = arith.cmpi sge, %42, %43 : vector<1x1024xi32>
    %c-4_i32_17 = arith.constant -4 : i32
    %45 = vector.broadcast %c-4_i32_17 : i32 to vector<1x1024xi32>
    %46 = arith.addi %40, %45 : vector<1x1024xi32>
    %c16_i32_18 = arith.constant 16 : i32
    %47 = vector.broadcast %c16_i32_18 : i32 to vector<1x1024xi32>
    %48 = arith.cmpi slt, %46, %47 : vector<1x1024xi32>
    %49 = arith.andi %44, %48 : vector<1x1024xi1>
    %c-2_i32 = arith.constant -2 : i32
    %50 = vector.broadcast %c-2_i32 : i32 to vector<1x1024xi32>
    %51 = arith.addi %40, %50 : vector<1x1024xi32>
    %c0_i32_19 = arith.constant 0 : i32
    %52 = vector.broadcast %c0_i32_19 : i32 to vector<1x1024xi32>
    %53 = arith.cmpi sge, %51, %52 : vector<1x1024xi32>
    %c-2_i32_20 = arith.constant -2 : i32
    %54 = vector.broadcast %c-2_i32_20 : i32 to vector<1x1024xi32>
    %55 = arith.addi %40, %54 : vector<1x1024xi32>
    %c16_i32_21 = arith.constant 16 : i32
    %56 = vector.broadcast %c16_i32_21 : i32 to vector<1x1024xi32>
    %57 = arith.cmpi slt, %55, %56 : vector<1x1024xi32>
    %58 = arith.andi %53, %57 : vector<1x1024xi1>
    %c-1_i32 = arith.constant -1 : i32
    %59 = vector.broadcast %c-1_i32 : i32 to vector<1x1024xi32>
    %60 = arith.addi %40, %59 : vector<1x1024xi32>
    %c0_i32_22 = arith.constant 0 : i32
    %61 = vector.broadcast %c0_i32_22 : i32 to vector<1x1024xi32>
    %62 = arith.cmpi sge, %60, %61 : vector<1x1024xi32>
    %c-1_i32_23 = arith.constant -1 : i32
    %63 = vector.broadcast %c-1_i32_23 : i32 to vector<1x1024xi32>
    %64 = arith.addi %40, %63 : vector<1x1024xi32>
    %c16_i32_24 = arith.constant 16 : i32
    %65 = vector.broadcast %c16_i32_24 : i32 to vector<1x1024xi32>
    %66 = arith.cmpi slt, %64, %65 : vector<1x1024xi32>
    %67 = arith.andi %62, %66 : vector<1x1024xi1>
    %c1_i32_25 = arith.constant 1 : i32
    %68 = vector.broadcast %c1_i32_25 : i32 to vector<1x1024xi32>
    %69 = arith.addi %40, %68 : vector<1x1024xi32>
    %c0_i32_26 = arith.constant 0 : i32
    %70 = vector.broadcast %c0_i32_26 : i32 to vector<1x1024xi32>
    %71 = arith.cmpi sge, %69, %70 : vector<1x1024xi32>
    %c1_i32_27 = arith.constant 1 : i32
    %72 = vector.broadcast %c1_i32_27 : i32 to vector<1x1024xi32>
    %73 = arith.addi %40, %72 : vector<1x1024xi32>
    %c16_i32_28 = arith.constant 16 : i32
    %74 = vector.broadcast %c16_i32_28 : i32 to vector<1x1024xi32>
    %75 = arith.cmpi slt, %73, %74 : vector<1x1024xi32>
    %76 = arith.andi %71, %75 : vector<1x1024xi1>
    %c2_i32 = arith.constant 2 : i32
    %77 = vector.broadcast %c2_i32 : i32 to vector<1x1024xi32>
    %78 = arith.addi %40, %77 : vector<1x1024xi32>
    %c0_i32_29 = arith.constant 0 : i32
    %79 = vector.broadcast %c0_i32_29 : i32 to vector<1x1024xi32>
    %80 = arith.cmpi sge, %78, %79 : vector<1x1024xi32>
    %c2_i32_30 = arith.constant 2 : i32
    %81 = vector.broadcast %c2_i32_30 : i32 to vector<1x1024xi32>
    %82 = arith.addi %40, %81 : vector<1x1024xi32>
    %c16_i32_31 = arith.constant 16 : i32
    %83 = vector.broadcast %c16_i32_31 : i32 to vector<1x1024xi32>
    %84 = arith.cmpi slt, %82, %83 : vector<1x1024xi32>
    %85 = arith.andi %80, %84 : vector<1x1024xi1>
    %c4_i32 = arith.constant 4 : i32
    %86 = vector.broadcast %c4_i32 : i32 to vector<1x1024xi32>
    %87 = arith.addi %40, %86 : vector<1x1024xi32>
    %c0_i32_32 = arith.constant 0 : i32
    %88 = vector.broadcast %c0_i32_32 : i32 to vector<1x1024xi32>
    %89 = arith.cmpi sge, %87, %88 : vector<1x1024xi32>
    %c4_i32_33 = arith.constant 4 : i32
    %90 = vector.broadcast %c4_i32_33 : i32 to vector<1x1024xi32>
    %91 = arith.addi %40, %90 : vector<1x1024xi32>
    %c16_i32_34 = arith.constant 16 : i32
    %92 = vector.broadcast %c16_i32_34 : i32 to vector<1x1024xi32>
    %93 = arith.cmpi slt, %91, %92 : vector<1x1024xi32>
    %94 = arith.andi %89, %93 : vector<1x1024xi1>
    %c0_35 = arith.constant 0 : index
    %c111 = arith.constant 111 : index
    %95 = vector.load %arg4[%c0_35, %c111] : memref<4x1536xf32, #tpu.memory_space<vmem>>, vector<4x1024xf32>
    %c0_i32_36 = arith.constant 0 : i32
    %96 = arith.sitofp %c0_i32_36 : i32 to f32
    %97 = vector.shape_cast %67 : vector<1x1024xi1> to vector<1x1024xi1>
    %98 = vector.broadcast %97 : vector<1x1024xi1> to vector<4x1024xi1>
    %99 = vector.broadcast %96 : f32 to vector<4x1024xf32>
    %100 = arith.select %98, %95, %99 : vector<4x1024xi1>, vector<4x1024xf32>
    %c0_37 = arith.constant 0 : index
    %c112 = arith.constant 112 : index
    %101 = vector.load %arg4[%c0_37, %c112] : memref<4x1536xf32, #tpu.memory_space<vmem>>, vector<4x1024xf32>
    %102 = tpu.concatenate %100, %101 in 0 : vector<4x1024xf32>, vector<4x1024xf32> -> vector<8x1024xf32>
    %c0_38 = arith.constant 0 : index
    %c0_39 = arith.constant 0 : index
    %103 = vector.load %arg5[%c0_38, %c0_39] : memref<101x1024xf32, #tpu.memory_space<vmem>>, vector<8x1024xf32>
    tpu.vector_store %arg5[%c0_38, %c0_39], %102 {strides = array<i32>} : memref<101x1024xf32, #tpu.memory_space<vmem>>, vector<8x1024xf32>,
    %c0_40 = arith.constant 0 : index
    %c113 = arith.constant 113 : index
    %104 = vector.load %arg4[%c0_40, %c113] : memref<4x1536xf32, #tpu.memory_space<vmem>>, vector<4x1024xf32>
    %c0_i32_41 = arith.constant 0 : i32
    %105 = arith.sitofp %c0_i32_41 : i32 to f32
    %106 = vector.shape_cast %76 : vector<1x1024xi1> to vector<1x1024xi1>
    %107 = vector.broadcast %106 : vector<1x1024xi1> to vector<4x1024xi1>
    %108 = vector.broadcast %105 : f32 to vector<4x1024xf32>
    %109 = arith.select %107, %104, %108 : vector<4x1024xi1>, vector<4x1024xf32>
    %c0_42 = arith.constant 0 : index
    %c127 = arith.constant 127 : index
    %110 = vector.load %arg4[%c0_42, %c127] : memref<4x1536xf32, #tpu.memory_space<vmem>>, vector<4x1024xf32>
    %c0_i32_43 = arith.constant 0 : i32
    %111 = arith.sitofp %c0_i32_43 : i32 to f32
    %112 = vector.shape_cast %67 : vector<1x1024xi1> to vector<1x1024xi1>
    %113 = vector.broadcast %112 : vector<1x1024xi1> to vector<4x1024xi1>
    %114 = vector.broadcast %111 : f32 to vector<4x1024xf32>
    %115 = arith.select %113, %110, %114 : vector<4x1024xi1>, vector<4x1024xf32>
    %116 = tpu.concatenate %109, %115 in 0 : vector<4x1024xf32>, vector<4x1024xf32> -> vector<8x1024xf32>
    %c8 = arith.constant 8 : index
    %c0_44 = arith.constant 0 : index
    %117 = vector.load %arg5[%c8, %c0_44] : memref<101x1024xf32, #tpu.memory_space<vmem>>, vector<8x1024xf32>
    tpu.vector_store %arg5[%c8, %c0_44], %116 {strides = array<i32>} : memref<101x1024xf32, #tpu.memory_space<vmem>>, vector<8x1024xf32>,
    %c0_45 = arith.constant 0 : index
    %c128_46 = arith.constant 128 : index
    %118 = vector.load %arg4[%c0_45, %c128_46] : memref<4x1536xf32, #tpu.memory_space<vmem>>, vector<4x1024xf32>
    %c0_47 = arith.constant 0 : index
    %c129 = arith.constant 129 : index
    %119 = vector.load %arg4[%c0_47, %c129] : memref<4x1536xf32, #tpu.memory_space<vmem>>, vector<4x1024xf32>
    %c0_i32_48 = arith.constant 0 : i32
    %120 = arith.sitofp %c0_i32_48 : i32 to f32
    %121 = vector.shape_cast %76 : vector<1x1024xi1> to vector<1x1024xi1>
    %122 = vector.broadcast %121 : vector<1x1024xi1> to vector<4x1024xi1>
    %123 = vector.broadcast %120 : f32 to vector<4x1024xf32>
    %124 = arith.select %122, %119, %123 : vector<4x1024xi1>, vector<4x1024xf32>
    %125 = tpu.concatenate %118, %124 in 0 : vector<4x1024xf32>, vector<4x1024xf32> -> vector<8x1024xf32>
    %c16 = arith.constant 16 : index
    %c0_49 = arith.constant 0 : index
    %126 = vector.load %arg5[%c16, %c0_49] : memref<101x1024xf32, #tpu.memory_space<vmem>>, vector<8x1024xf32>
    tpu.vector_store %arg5[%c16, %c0_49], %125 {strides = array<i32>} : memref<101x1024xf32, #tpu.memory_space<vmem>>, vector<8x1024xf32>,
    %c0_50 = arith.constant 0 : index
    %c143 = arith.constant 143 : index
    %127 = vector.load %arg4[%c0_50, %c143] : memref<4x1536xf32, #tpu.memory_space<vmem>>, vector<4x1024xf32>
    %c0_i32_51 = arith.constant 0 : i32
    %128 = arith.sitofp %c0_i32_51 : i32 to f32
    %129 = vector.shape_cast %67 : vector<1x1024xi1> to vector<1x1024xi1>
    %130 = vector.broadcast %129 : vector<1x1024xi1> to vector<4x1024xi1>
    %131 = vector.broadcast %128 : f32 to vector<4x1024xf32>
    %132 = arith.select %130, %127, %131 : vector<4x1024xi1>, vector<4x1024xf32>
    %c0_52 = arith.constant 0 : index
    %c144 = arith.constant 144 : index
    %133 = vector.load %arg4[%c0_52, %c144] : memref<4x1536xf32, #tpu.memory_space<vmem>>, vector<4x1024xf32>
    %134 = tpu.concatenate %132, %133 in 0 : vector<4x1024xf32>, vector<4x1024xf32> -> vector<8x1024xf32>
    %c24 = arith.constant 24 : index
    %c0_53 = arith.constant 0 : index
    %135 = vector.load %arg5[%c24, %c0_53] : memref<101x1024xf32, #tpu.memory_space<vmem>>, vector<8x1024xf32>
    tpu.vector_store %arg5[%c24, %c0_53], %134 {strides = array<i32>} : memref<101x1024xf32, #tpu.memory_space<vmem>>, vector<8x1024xf32>,
    %c0_54 = arith.constant 0 : index
    %c145 = arith.constant 145 : index
    %136 = vector.load %arg4[%c0_54, %c145] : memref<4x1536xf32, #tpu.memory_space<vmem>>, vector<4x1024xf32>
    %c0_i32_55 = arith.constant 0 : i32
    %137 = arith.sitofp %c0_i32_55 : i32 to f32
    %138 = vector.shape_cast %76 : vector<1x1024xi1> to vector<1x1024xi1>
    %139 = vector.broadcast %138 : vector<1x1024xi1> to vector<4x1024xi1>
    %140 = vector.broadcast %137 : f32 to vector<4x1024xf32>
    %141 = arith.select %139, %136, %140 : vector<4x1024xi1>, vector<4x1024xf32>
    %c0_56 = arith.constant 0 : index
    %c94 = arith.constant 94 : index
    %142 = vector.load %arg4[%c0_56, %c94] : memref<4x1536xf32, #tpu.memory_space<vmem>>, vector<4x1024xf32>
    %c0_i32_57 = arith.constant 0 : i32
    %143 = arith.sitofp %c0_i32_57 : i32 to f32
    %144 = vector.shape_cast %58 : vector<1x1024xi1> to vector<1x1024xi1>
    %145 = vector.broadcast %144 : vector<1x1024xi1> to vector<4x1024xi1>
    %146 = vector.broadcast %143 : f32 to vector<4x1024xf32>
    %147 = arith.select %145, %142, %146 : vector<4x1024xi1>, vector<4x1024xf32>
    %148 = tpu.concatenate %141, %147 in 0 : vector<4x1024xf32>, vector<4x1024xf32> -> vector<8x1024xf32>
    %c32 = arith.constant 32 : index
    %c0_58 = arith.constant 0 : index
    %149 = vector.load %arg5[%c32, %c0_58] : memref<101x1024xf32, #tpu.memory_space<vmem>>, vector<8x1024xf32>
    tpu.vector_store %arg5[%c32, %c0_58], %148 {strides = array<i32>} : memref<101x1024xf32, #tpu.memory_space<vmem>>, vector<8x1024xf32>,
    %c0_59 = arith.constant 0 : index
    %c96 = arith.constant 96 : index
    %150 = vector.load %arg4[%c0_59, %c96] : memref<4x1536xf32, #tpu.memory_space<vmem>>, vector<4x1024xf32>
    %c0_60 = arith.constant 0 : index
    %c98 = arith.constant 98 : index
    %151 = vector.load %arg4[%c0_60, %c98] : memref<4x1536xf32, #tpu.memory_space<vmem>>, vector<4x1024xf32>
    %c0_i32_61 = arith.constant 0 : i32
    %152 = arith.sitofp %c0_i32_61 : i32 to f32
    %153 = vector.shape_cast %85 : vector<1x1024xi1> to vector<1x1024xi1>
    %154 = vector.broadcast %153 : vector<1x1024xi1> to vector<4x1024xi1>
    %155 = vector.broadcast %152 : f32 to vector<4x1024xf32>
    %156 = arith.select %154, %151, %155 : vector<4x1024xi1>, vector<4x1024xf32>
    %157 = tpu.concatenate %150, %156 in 0 : vector<4x1024xf32>, vector<4x1024xf32> -> vector<8x1024xf32>
    %c40 = arith.constant 40 : index
    %c0_62 = arith.constant 0 : index
    %158 = vector.load %arg5[%c40, %c0_62] : memref<101x1024xf32, #tpu.memory_space<vmem>>, vector<8x1024xf32>
    tpu.vector_store %arg5[%c40, %c0_62], %157 {strides = array<i32>} : memref<101x1024xf32, #tpu.memory_space<vmem>>, vector<8x1024xf32>,
    %c0_63 = arith.constant 0 : index
    %c126 = arith.constant 126 : index
    %159 = vector.load %arg4[%c0_63, %c126] : memref<4x1536xf32, #tpu.memory_space<vmem>>, vector<4x1024xf32>
    %c0_i32_64 = arith.constant 0 : i32
    %160 = arith.sitofp %c0_i32_64 : i32 to f32
    %161 = vector.shape_cast %58 : vector<1x1024xi1> to vector<1x1024xi1>
    %162 = vector.broadcast %161 : vector<1x1024xi1> to vector<4x1024xi1>
    %163 = vector.broadcast %160 : f32 to vector<4x1024xf32>
    %164 = arith.select %162, %159, %163 : vector<4x1024xi1>, vector<4x1024xf32>
    %c0_65 = arith.constant 0 : index
    %c130 = arith.constant 130 : index
    %165 = vector.load %arg4[%c0_65, %c130] : memref<4x1536xf32, #tpu.memory_space<vmem>>, vector<4x1024xf32>
    %c0_i32_66 = arith.constant 0 : i32
    %166 = arith.sitofp %c0_i32_66 : i32 to f32
    %167 = vector.shape_cast %85 : vector<1x1024xi1> to vector<1x1024xi1>
    %168 = vector.broadcast %167 : vector<1x1024xi1> to vector<4x1024xi1>
    %169 = vector.broadcast %166 : f32 to vector<4x1024xf32>
    %170 = arith.select %168, %165, %169 : vector<4x1024xi1>, vector<4x1024xf32>
    %171 = tpu.concatenate %164, %170 in 0 : vector<4x1024xf32>, vector<4x1024xf32> -> vector<8x1024xf32>
    %c48 = arith.constant 48 : index
    %c0_67 = arith.constant 0 : index
    %172 = vector.load %arg5[%c48, %c0_67] : memref<101x1024xf32, #tpu.memory_space<vmem>>, vector<8x1024xf32>
    tpu.vector_store %arg5[%c48, %c0_67], %171 {strides = array<i32>} : memref<101x1024xf32, #tpu.memory_space<vmem>>, vector<8x1024xf32>,
    %c0_68 = arith.constant 0 : index
    %c158 = arith.constant 158 : index
    %173 = vector.load %arg4[%c0_68, %c158] : memref<4x1536xf32, #tpu.memory_space<vmem>>, vector<4x1024xf32>
    %c0_i32_69 = arith.constant 0 : i32
    %174 = arith.sitofp %c0_i32_69 : i32 to f32
    %175 = vector.shape_cast %58 : vector<1x1024xi1> to vector<1x1024xi1>
    %176 = vector.broadcast %175 : vector<1x1024xi1> to vector<4x1024xi1>
    %177 = vector.broadcast %174 : f32 to vector<4x1024xf32>
    %178 = arith.select %176, %173, %177 : vector<4x1024xi1>, vector<4x1024xf32>
    %c0_70 = arith.constant 0 : index
    %c160 = arith.constant 160 : index
    %179 = vector.load %arg4[%c0_70, %c160] : memref<4x1536xf32, #tpu.memory_space<vmem>>, vector<4x1024xf32>
    %180 = tpu.concatenate %178, %179 in 0 : vector<4x1024xf32>, vector<4x1024xf32> -> vector<8x1024xf32>
    %c56 = arith.constant 56 : index
    %c0_71 = arith.constant 0 : index
    %181 = vector.load %arg5[%c56, %c0_71] : memref<101x1024xf32, #tpu.memory_space<vmem>>, vector<8x1024xf32>
    tpu.vector_store %arg5[%c56, %c0_71], %180 {strides = array<i32>} : memref<101x1024xf32, #tpu.memory_space<vmem>>, vector<8x1024xf32>,
    %c0_72 = arith.constant 0 : index
    %c162 = arith.constant 162 : index
    %182 = vector.load %arg4[%c0_72, %c162] : memref<4x1536xf32, #tpu.memory_space<vmem>>, vector<4x1024xf32>
    %c0_i32_73 = arith.constant 0 : i32
    %183 = arith.sitofp %c0_i32_73 : i32 to f32
    %184 = vector.shape_cast %85 : vector<1x1024xi1> to vector<1x1024xi1>
    %185 = vector.broadcast %184 : vector<1x1024xi1> to vector<4x1024xi1>
    %186 = vector.broadcast %183 : f32 to vector<4x1024xf32>
    %187 = arith.select %185, %182, %186 : vector<4x1024xi1>, vector<4x1024xf32>
    %c0_74 = arith.constant 0 : index
    %c60 = arith.constant 60 : index
    %188 = vector.load %arg4[%c0_74, %c60] : memref<4x1536xf32, #tpu.memory_space<vmem>>, vector<4x1024xf32>
    %c0_i32_75 = arith.constant 0 : i32
    %189 = arith.sitofp %c0_i32_75 : i32 to f32
    %190 = vector.shape_cast %49 : vector<1x1024xi1> to vector<1x1024xi1>
    %191 = vector.broadcast %190 : vector<1x1024xi1> to vector<4x1024xi1>
    %192 = vector.broadcast %189 : f32 to vector<4x1024xf32>
    %193 = arith.select %191, %188, %192 : vector<4x1024xi1>, vector<4x1024xf32>
    %194 = tpu.concatenate %187, %193 in 0 : vector<4x1024xf32>, vector<4x1024xf32> -> vector<8x1024xf32>
    %c64 = arith.constant 64 : index
    %c0_76 = arith.constant 0 : index
    %195 = vector.load %arg5[%c64, %c0_76] : memref<101x1024xf32, #tpu.memory_space<vmem>>, vector<8x1024xf32>
    tpu.vector_store %arg5[%c64, %c0_76], %194 {strides = array<i32>} : memref<101x1024xf32, #tpu.memory_space<vmem>>, vector<8x1024xf32>,
    %c0_77 = arith.constant 0 : index
    %c64_78 = arith.constant 64 : index
    %196 = vector.load %arg4[%c0_77, %c64_78] : memref<4x1536xf32, #tpu.memory_space<vmem>>, vector<4x1024xf32>
    %c0_79 = arith.constant 0 : index
    %c68 = arith.constant 68 : index
    %197 = vector.load %arg4[%c0_79, %c68] : memref<4x1536xf32, #tpu.memory_space<vmem>>, vector<4x1024xf32>
    %c0_i32_80 = arith.constant 0 : i32
    %198 = arith.sitofp %c0_i32_80 : i32 to f32
    %199 = vector.shape_cast %94 : vector<1x1024xi1> to vector<1x1024xi1>
    %200 = vector.broadcast %199 : vector<1x1024xi1> to vector<4x1024xi1>
    %201 = vector.broadcast %198 : f32 to vector<4x1024xf32>
    %202 = arith.select %200, %197, %201 : vector<4x1024xi1>, vector<4x1024xf32>
    %203 = tpu.concatenate %196, %202 in 0 : vector<4x1024xf32>, vector<4x1024xf32> -> vector<8x1024xf32>
    %c72 = arith.constant 72 : index
    %c0_81 = arith.constant 0 : index
    %204 = vector.load %arg5[%c72, %c0_81] : memref<101x1024xf32, #tpu.memory_space<vmem>>, vector<8x1024xf32>
    tpu.vector_store %arg5[%c72, %c0_81], %203 {strides = array<i32>} : memref<101x1024xf32, #tpu.memory_space<vmem>>, vector<8x1024xf32>,
    %c0_82 = arith.constant 0 : index
    %c124 = arith.constant 124 : index
    %205 = vector.load %arg4[%c0_82, %c124] : memref<4x1536xf32, #tpu.memory_space<vmem>>, vector<4x1024xf32>
    %c0_i32_83 = arith.constant 0 : i32
    %206 = arith.sitofp %c0_i32_83 : i32 to f32
    %207 = vector.shape_cast %49 : vector<1x1024xi1> to vector<1x1024xi1>
    %208 = vector.broadcast %207 : vector<1x1024xi1> to vector<4x1024xi1>
    %209 = vector.broadcast %206 : f32 to vector<4x1024xf32>
    %210 = arith.select %208, %205, %209 : vector<4x1024xi1>, vector<4x1024xf32>
    %c0_84 = arith.constant 0 : index
    %c132 = arith.constant 132 : index
    %211 = vector.load %arg4[%c0_84, %c132] : memref<4x1536xf32, #tpu.memory_space<vmem>>, vector<4x1024xf32>
    %c0_i32_85 = arith.constant 0 : i32
    %212 = arith.sitofp %c0_i32_85 : i32 to f32
    %213 = vector.shape_cast %94 : vector<1x1024xi1> to vector<1x1024xi1>
    %214 = vector.broadcast %213 : vector<1x1024xi1> to vector<4x1024xi1>
    %215 = vector.broadcast %212 : f32 to vector<4x1024xf32>
    %216 = arith.select %214, %211, %215 : vector<4x1024xi1>, vector<4x1024xf32>
    %217 = tpu.concatenate %210, %216 in 0 : vector<4x1024xf32>, vector<4x1024xf32> -> vector<8x1024xf32>
    %c80 = arith.constant 80 : index
    %c0_86 = arith.constant 0 : index
    %218 = vector.load %arg5[%c80, %c0_86] : memref<101x1024xf32, #tpu.memory_space<vmem>>, vector<8x1024xf32>
    tpu.vector_store %arg5[%c80, %c0_86], %217 {strides = array<i32>} : memref<101x1024xf32, #tpu.memory_space<vmem>>, vector<8x1024xf32>,
    %c0_87 = arith.constant 0 : index
    %c188 = arith.constant 188 : index
    %219 = vector.load %arg4[%c0_87, %c188] : memref<4x1536xf32, #tpu.memory_space<vmem>>, vector<4x1024xf32>
    %c0_i32_88 = arith.constant 0 : i32
    %220 = arith.sitofp %c0_i32_88 : i32 to f32
    %221 = vector.shape_cast %49 : vector<1x1024xi1> to vector<1x1024xi1>
    %222 = vector.broadcast %221 : vector<1x1024xi1> to vector<4x1024xi1>
    %223 = vector.broadcast %220 : f32 to vector<4x1024xf32>
    %224 = arith.select %222, %219, %223 : vector<4x1024xi1>, vector<4x1024xf32>
    %c0_89 = arith.constant 0 : index
    %c192 = arith.constant 192 : index
    %225 = vector.load %arg4[%c0_89, %c192] : memref<4x1536xf32, #tpu.memory_space<vmem>>, vector<4x1024xf32>
    %226 = tpu.concatenate %224, %225 in 0 : vector<4x1024xf32>, vector<4x1024xf32> -> vector<8x1024xf32>
    %c88 = arith.constant 88 : index
    %c0_90 = arith.constant 0 : index
    %227 = vector.load %arg5[%c88, %c0_90] : memref<101x1024xf32, #tpu.memory_space<vmem>>, vector<8x1024xf32>
    tpu.vector_store %arg5[%c88, %c0_90], %226 {strides = array<i32>} : memref<101x1024xf32, #tpu.memory_space<vmem>>, vector<8x1024xf32>,
    %c0_91 = arith.constant 0 : index
    %c196 = arith.constant 196 : index
    %228 = vector.load %arg4[%c0_91, %c196] : memref<4x1536xf32, #tpu.memory_space<vmem>>, vector<4x1024xf32>
    %c0_i32_92 = arith.constant 0 : i32
    %229 = arith.sitofp %c0_i32_92 : i32 to f32
    %230 = vector.shape_cast %94 : vector<1x1024xi1> to vector<1x1024xi1>
    %231 = vector.broadcast %230 : vector<1x1024xi1> to vector<4x1024xi1>
    %232 = vector.broadcast %229 : f32 to vector<4x1024xf32>
    %233 = arith.select %231, %228, %232 : vector<4x1024xi1>, vector<4x1024xf32>
    %c96_93 = arith.constant 96 : index
    %c0_94 = arith.constant 0 : index
    %234 = vector.load %arg5[%c96_93, %c0_94] : memref<101x1024xf32, #tpu.memory_space<vmem>>, vector<4x1024xf32>
    tpu.vector_store %arg5[%c96_93, %c0_94], %233 {strides = array<i32>} : memref<101x1024xf32, #tpu.memory_space<vmem>>, vector<4x1024xf32>,
    %cst_95 = arith.constant 1.000000e+00 : f32
    %235 = vector.broadcast %cst_95 : f32 to vector<1x1024xf32>
    %c100 = arith.constant 100 : index
    %c0_96 = arith.constant 0 : index
    %236 = vector.load %arg5[%c100, %c0_96] : memref<101x1024xf32, #tpu.memory_space<vmem>>, vector<1x1024xf32>
    tpu.vector_store %arg5[%c100, %c0_96], %235 {strides = array<i32>} : memref<101x1024xf32, #tpu.memory_space<vmem>>, vector<1x1024xf32>,
    %c0_97 = arith.constant 0 : index
    %c0_98 = arith.constant 0 : index
    %237 = vector.load %arg2[%c0_97, %c0_98] : memref<8x101xf32, #tpu.memory_space<vmem>>, vector<8x101xf32>
    %c0_99 = arith.constant 0 : index
    %c0_100 = arith.constant 0 : index
    %238 = vector.load %arg5[%c0_99, %c0_100] : memref<101x1024xf32, #tpu.memory_space<vmem>>, vector<101x1024xf32>
    %cst_101 = arith.constant dense<0.000000e+00> : vector<8x1024xf32>
    %239 = tpu.matmul %237, %238, %cst_101 {dimension_numbers = #tpu.dot_dimension_numbers<[1], [0], [0], [1], [0, 0, 1, 1], [], []>} : vector<8x101xf32>, vector<101x1024xf32>, vector<8x1024xf32> -> vector<8x1024xf32>
    %240 = vector.extract_strided_slice %239 {offsets = [0, 0], sizes = [8, 256], strides = [1, 1]} : vector<8x1024xf32> to vector<8x256xf32>
    %c0_102 = arith.constant 0 : index
    %c0_103 = arith.constant 0 : index
    %c0_104 = arith.constant 0 : index
    %241 = vector.load %arg3[%c0_102, %c0_103, %c0_104] : memref<2x8x256xf32, #tpu.memory_space<vmem>>, vector<1x8x256xf32>
    %242 = vector.shape_cast %241 : vector<1x8x256xf32> to vector<8x256xf32>
    %243 = vector.shape_cast %240 : vector<8x256xf32> to vector<1x8x256xf32>
    tpu.vector_store %arg3[%c0_102, %c0_103, %c0_104], %243 {strides = array<i32>} : memref<2x8x256xf32, #tpu.memory_space<vmem>>, vector<1x8x256xf32>,
    %244 = vector.extract_strided_slice %239 {offsets = [0, 512], sizes = [8, 256], strides = [1, 1]} : vector<8x1024xf32> to vector<8x256xf32>
    %c1_105 = arith.constant 1 : index
    %c0_106 = arith.constant 0 : index
    %c0_107 = arith.constant 0 : index
    %245 = vector.load %arg3[%c1_105, %c0_106, %c0_107] : memref<2x8x256xf32, #tpu.memory_space<vmem>>, vector<1x8x256xf32>
    %246 = vector.shape_cast %245 : vector<1x8x256xf32> to vector<8x256xf32>
    %247 = vector.shape_cast %244 : vector<8x256xf32> to vector<1x8x256xf32>
    tpu.vector_store %arg3[%c1_105, %c0_106, %c0_107], %247 {strides = array<i32>} : memref<2x8x256xf32, #tpu.memory_space<vmem>>, vector<1x8x256xf32>,
    return
  }
  func.func @transform_0(%arg0: i32) -> (i32, i32, i32) {
    %c0_i32 = arith.constant 0 : i32
    %c0_i32_0 = arith.constant 0 : i32
    %c0_i32_1 = arith.constant 0 : i32
    return %arg0, %c0_i32, %c0_i32_0 : i32, i32, i32
  }
  func.func @transform_1(%arg0: i32) -> (i32, i32) {
    %c0_i32 = arith.constant 0 : i32
    %c0_i32_0 = arith.constant 0 : i32
    %c0_i32_1 = arith.constant 0 : i32
    return %c0_i32, %c0_i32_0 : i32, i32
  }
  func.func @transform_2(%arg0: i32) -> (i32, i32, i32) {
    %c0_i32 = arith.constant 0 : i32
    %c0_i32_0 = arith.constant 0 : i32
    %c0_i32_1 = arith.constant 0 : i32
    return %arg0, %c0_i32, %c0_i32_0 : i32, i32, i32
  }
}

</mosaic_0001>

<bundles_post_ra>
// kernel: tpu_custom_call.1
= control target key start
LH: loop header
LB: loop body
LE: loop exit
PB: predicated region body
PF: predicated region fallthrough
CT: control target
= control target key end

     0   :  { %7 = vsyncpa [#allocation5], 0  ;;  %s3755_s0 = inlined_call_operand.hbm [shape: f32[2,4,256], index: 0, kind: input, shape index: {}]   ;;  %s3756_s1 = inlined_call_operand.hbm [shape: f32[8,101], index: 1, kind: input, shape index: {}]   ;;  %s3757_s2 = inlined_call_operand.hbm [shape: f32[2,8,256], index: 2, kind: output, shape index: {}]  }
   0x1   :  { %8 = vsyncpa [#allocation8], 0 }
   0x2   :  { %9 = vsyncpa [#allocation6], 0  ;;  %s2631_s9 = smov [#allocation4]  }
   0x3   :  { %s15_s10 = sshll.u32 %s2631_s9, 4  ;;  %s16_s10 = int_to_ptr.vmem [resolvable:$true] %s15_s10 }
   0x4   :  { %s2573_s11 = scalar_lea.vmem %s16_s10, 256  ;;  %p2578_p1 = scmp.lt.s32.totalorder %s16_s10, %s16_s10 }
   0x5   :  { %p2574_p0 = scmp.ne.s32.totalorder %s16_s10, %s2573_s11  ;;  %p2579_p2 = scmp.lt.s32.totalorder %s2573_s11, %s2573_s11 }
   0x7   :  { %p2580_p3 = por %p2579_p2, %p2578_p1 }
   0x9   :  { %p2581_p4 = pnand %p2580_p3, %p2574_p0 }
   0xb   :  { %2584 = shalt.err (!%p2581_p4)
}
   0xc   :  { %s2632_s12 = smov 128   ;;  %s2633_s13 = smov 8  }
   0xd   :  { %21 = dma.hbm_to_vmem [thread:$0]  %s3755_s0, 256, %s16_s10, [#allocation5], %s2632_s12, %s2632_s12, %s2633_s13  }
   0xe   :  { %s2634_s16 = smov [#allocation7]  }
   0xf   :  { %s28_s17 = sshll.u32 %s2634_s16, 4  ;;  %s29_s17 = int_to_ptr.vmem [resolvable:$true] %s28_s17 }
  0x10   :  { %s2593_s18 = scalar_lea.vmem %s29_s17, 128  ;;  %p2598_p6 = scmp.lt.s32.totalorder %s29_s17, %s29_s17 }
  0x11   :  { %p2594_p5 = scmp.ne.s32.totalorder %s29_s17, %s2593_s18  ;;  %p2599_p7 = scmp.lt.s32.totalorder %s2593_s18, %s2593_s18 }
  0x13   :  { %p2600_p8 = por %p2599_p7, %p2598_p6 }
  0x15   :  { %p2601_p9 = pnand %p2600_p8, %p2594_p5 }
  0x17   :  { %2604 = shalt.err (!%p2601_p9)
}
  0x18   :  { %31 = dma.hbm_to_vmem [thread:$0]  %s3756_s1, 128, %s29_s17, [#allocation8]  }
  0x19   :  { %2625 = dma.done.wait [#allocation5], 256  }
  0x1a   :  { %2626 = vsyncadd [#allocation5], 4294967040 }
  0x1b   :  { %2627 = dma.done.wait [#allocation8], 128  }
  0x1c   :  { %2628 = vsyncadd [#allocation8], 4294967168  ;;  %v2635_v0 = vmov 0.0   ;;  %v2681_v1 = vld [vmem:[#allocation4] sm:$0xff]  ;;  %v2683_v2 = vld [vmem:[#allocation4 + $0x8] sm:$0xff]  ;;  %s2636_s0 = smov 17   ;;  %v49_v20 = vlaneseq }
  0x1d   :  { %42 = vst [vmem:[#allocation2 + $0x20] sm:$0xff] %v2635_v0  ;;  %41 = vst [vmem:[#allocation2 + $0x18] sm:$0xff] %v2635_v0  ;;  %2387 = vmatprep.mubr.f32.mxu0 %v2635_v0  ;;  %2458 = vmatprep.mubr.f32.mxu1 %v2635_v0  ;;  %s2637_s1 = smov 16   ;;  %s2638_s21 = smov 15   ;;  %v2743_v18 = vcombine.high %v2681_v1, %v2681_v1  ;;  %v2757_v24 = vcombine.high %v2683_v2, %v2683_v2  ;;  %vm490_vm0 = vcmask 138240   ;;  %vm538_vm2 = vcmask 130048  }
  0x1e   :  { %38 = vst [vmem:[#allocation2] sm:$0xff] %v2635_v0  ;;  %39 = vst [vmem:[#allocation2 + $0x8] sm:$0xff] %v2635_v0  ;;  %s2639_s22 = smov 1   ;;  %s2640_s23 = smov 60   ;;  %v50_v22 = vand.u32 127, %v49_v20  ;;  %vm3760_vm5 = vcmask 1043456  }
  0x1f   :  { %40 = vst [vmem:[#allocation2 + $0x10] sm:$0xff] %v2635_v0  ;;  %45 = vst [vmem:[#allocation2 + $0x4] sm:$0xff] %v2681_v1  ;;  %s2641_s24 = smov 30   ;;  %s2642_s25 = smov 127   ;;  %vm3763_vm13 = vcmask 121856   ;;  %vm3762_vm14 = vcmask 7168  }
  0x20   :  { %48 = vst [vmem:[#allocation2 + $0x14] sm:$0xff] %v2683_v2  ;;  %v52_v26 = vadd.s32 256, %v50_v22  ;;  %v51_v28 = vadd.s32 128, %v50_v22  ;;  %v53_v33 = vadd.s32 384, %v50_v22  ;;  %v54_v34 = vadd.s32 512, %v50_v22  ;;  %s2643_s26 = smov 64  }
  0x21   :  { %v62_v35 = vand.u32 511, %v50_v22  ;;  %v55_v39 = vadd.s32 640, %v50_v22  ;;  %v56_v44 = vadd.s32 768, %v50_v22  ;;  %v57_v51 = vadd.s32 896, %v50_v22  ;;  %s2644_s27 = smov 96   ;;  %s2645_s28 = smov 113  }
  0x22   :  { %v76_v32 = vand.u32 511, %v52_v26  ;;  %v69_v36 = vand.u32 511, %v51_v28  ;;  %v83_v41 = vand.u32 511, %v53_v33  ;;  %v90_v42 = vand.u32 511, %v54_v34  ;;  %s2647_s29 = smov 112   ;;  %s2648_s30 = smov 124  }
  0x23   :  { %v2770_v43 = vand.u32 15, %v62_v35  ;;  %v97_v47 = vand.u32 511, %v55_v39  ;;  %v104_v53 = vand.u32 511, %v56_v44  ;;  %v111_v59 = vand.u32 511, %v57_v51  ;;  %s2649_s3 = smov 68   ;;  %s2650_s4 = smov 4  }
  0x24   :  { %v446_v3 = vld [vmem:[#allocation2 + $0x20] sm:$0xf]  ;;  %v732_v29 = vld [vmem:[#allocation2 + $0x24] sm:$0xf]  ;;  %v2768_v40 = vand.u32 15, %v76_v32  ;;  %v2772_v45 = vand.u32 15, %v69_v36 }
  0x25   :  { %488 = vrot.lane.b32.xlu0 %v446_v3, %s2636_s0  ;;  %v519_v16 = vcombine.low %v446_v3, %v446_v3  ;;  %v576_v17 = vld [vmem:[#allocation2 + $0x20] sm:$0xf]  ;;  %v2774_v49 = vand.u32 15, %v83_v41  ;;  %v2776_v50 = vand.u32 15, %v90_v42  ;;  %v2779_v52 = vadd.s32 4294967295, %v2770_v43  ;;  %s2651_s5 = smov 94  }
  0x26   :  { %v443_v4 = vld [vmem:[#allocation2 + $0x8] sm:$0xff]  ;;  %v442_v5 = vld [vmem:[#allocation2] sm:$0xff]  ;;  %v315_v54 = vadd.s32 4294967295, %v2772_v45  ;;  %v2782_v55 = vand.u32 15, %v97_v47  ;;  %v2787_v61 = vand.u32 15, %v104_v53  ;;  %s2652_s6 = smov 126  }
  0x27   :  { %476 = vrot.lane.b32.xlu1 %v443_v4, %s2636_s0  ;;  %v2687_v6 = vcombine.high %v443_v4, %v443_v4  ;;  %v444_v7 = vld [vmem:[#allocation2 + $0x10] sm:$0xff]  ;;  %v445_v9 = vld [vmem:[#allocation2 + $0x18] sm:$0xff]  ;;  %v2695_v11 = vcombine.high %v442_v5, %v442_v5  ;;  %v515_v12 = vcombine.low %v442_v5, %v442_v5  ;;  %v516_v13 = vcombine.low %v443_v4, %v443_v4  ;;  %s2653_s7 = smov 98   ;;  %s2654_s8 = smov 2  }
  0x28   :  { %v2690_v8 = vcombine.high %v444_v7, %v444_v7  ;;  %v2693_v10 = vcombine.high %v445_v9, %v445_v9  ;;  %v517_v14 = vcombine.low %v444_v7, %v444_v7  ;;  %v518_v15 = vcombine.low %v445_v9, %v445_v9  ;;  %v2745_v19 = vld [vmem:[#allocation2 + $0xc] sm:$0xff]  ;;  %v2759_v25 = vld [vmem:[#allocation2 + $0x1c] sm:$0xff]  ;;  %s2655_s9 = smov 34   ;;  %s2656_s10 = smov 111  }
  0x29   :  { %472 = vrot.lane.b32.xlu0 %v442_v5, %s2636_s0  ;;  %3803 = vst [vmem:[#allocation13_spill] sm:$0xff] %v2687_v6  ;;  %v2751_v21 = vcombine.high %v2745_v19, %v2745_v19  ;;  %v2765_v27 = vcombine.high %v2759_v25, %v2759_v25  ;;  %v318_v58 = vadd.s32 4294967295, %v2776_v50  ;;  %vm3758_vm1 = vcmp.ge.s32.totalorder %v2779_v52, 0  ;;  %s2657_s11 = smov 32   ;;  %s2658_s12 = smov [#allocation9]  }
  0x2a   :  { %3804 = vst [vmem:[#allocation14_spill] sm:$0xff] %v2693_v10  ;;  %vm323_vm3 = vcmp.ge.s32.totalorder %v315_v54, 0  ;;  %vm331_vm4 = vcmp.lt.s32.totalorder %v315_v54, 16  ;;  %v319_v62 = vadd.s32 4294967295, %v2782_v55  ;;  %v2830_v54 = vadd.s32 1, %v2770_v43  ;;  %s2475_s13 = sshll.u32 %s2658_s12, 4  ;;  %s2476_s13 = int_to_ptr.vmem [resolvable:$true] %s2475_s13 }
  0x2b   :  { %478 = vrot.lane.b32.xlu1 %v2687_v6, %s2636_s0  ;;  %3805 = vst [vmem:[#allocation15_spill] sm:$0xff] %v2751_v21  ;;  %3806 = vst [vmem:[#allocation16_spill] sm:$0xff] %v2765_v27  ;;  %vm326_vm7 = vcmp.ge.s32.totalorder %v318_v58, 0  ;;  %vm334_vm8 = vcmp.lt.s32.totalorder %v318_v58, 16  ;;  %s2605_s14 = scalar_lea.vmem %s2476_s13, 512  ;;  %p2610_p11 = scmp.lt.s32.totalorder %s2476_s13, %s2476_s13 }
  0x2c   :  { %vm2793_vm6 = vmand %vm323_vm3, %vm331_vm4  ;;  %vm327_vm9 = vcmp.ge.s32.totalorder %v319_v62, 0  ;;  %vm335_vm10 = vcmp.lt.s32.totalorder %v319_v62, 16  ;;  %vm3759_vm15 = vcmp.lt.s32.totalorder %v2830_v54, 16  ;;  %p2606_p10 = scmp.ne.s32.totalorder %s2476_s13, %s2605_s14  ;;  %p2611_p12 = scmp.lt.s32.totalorder %s2605_s14, %s2605_s14 }
  0x2d   :  { %480 = vrot.lane.b32.xlu0 %v444_v7, %s2636_s0  ;;  %vm2804_vm11 = vmand %vm326_vm7, %vm334_vm8  ;;  %vm3764_vm8 = vcmask 490496  }
  0x2e   :  { %vm2812_vm12 = vmand %vm327_vm9, %vm335_vm10  ;;  %p2612_p13 = por %p2611_p12, %p2610_p11 }
  0x2f   :  { %482 = vrot.lane.b32.xlu1 %v2690_v8, %s2636_s0 }
  0x30   :  { %p2613_p0 = pnand %p2612_p13, %p2606_p10 }
  0x31   :  { %484 = vrot.lane.b32.xlu0 %v445_v9, %s2636_s0 }
  0x33   :  { %486 = vrot.lane.b32.xlu1 %v2693_v10, %s2636_s0 }
  0x35   :  { %474 = vrot.lane.b32.xlu0 %v2695_v11, %s2636_s0 }
  0x37   :  { %520 = vrot.lane.b32.xlu1 %v515_v12, %s2637_s1  ;;  %v2799_v12 = vand.u32 15, %v111_v59  ;;  %v411_v59 = vadd.s32 4, %v2772_v45 }
  0x39   :  { %522 = vrot.lane.b32.xlu0 %v442_v5, %s2637_s1  ;;  %vm419_vm3 = vcmp.ge.s32.totalorder %v411_v59, 0  ;;  %vm427_vm4 = vcmp.lt.s32.totalorder %v411_v59, 16  ;;  %v3821_v59 = vmov 0 }
  0x3a   :  { %vm2855_vm10 = vmand %vm419_vm3, %vm427_vm4 }
  0x3b   :  { %524 = vrot.lane.b32.xlu1 %v516_v13, %s2637_s1 }
  0x3d   :  { %526 = vrot.lane.b32.xlu0 %v443_v4, %s2637_s1 }
  0x3f   :  { %528 = vrot.lane.b32.xlu1 %v517_v14, %s2637_s1 }
  0x41   :  { %530 = vrot.lane.b32.xlu0 %v444_v7, %s2637_s1 }
  0x43   :  { %532 = vrot.lane.b32.xlu1 %v518_v15, %s2637_s1 }
  0x45   :  { %534 = vrot.lane.b32.xlu0 %v445_v9, %s2637_s1 }
  0x47   :  { %536 = vrot.lane.b32.xlu1 %v519_v16, %s2637_s1 }
  0x49   :  { %602 = vrot.lane.b32.xlu0 %v442_v5, %s2638_s21 }
  0x4b   :  { %604 = vrot.lane.b32.xlu1 %v2695_v11, %s2638_s21 }
  0x4d   :  { %606 = vrot.lane.b32.xlu0 %v443_v4, %s2638_s21 }
  0x4f   :  { %608 = vrot.lane.b32.xlu1 %v2687_v6, %s2638_s21 }
  0x51   :  { %610 = vrot.lane.b32.xlu0 %v444_v7, %s2638_s21 }
  0x53   :  { %612 = vrot.lane.b32.xlu1 %v2690_v8, %s2638_s21 }
  0x55   :  { %614 = vrot.lane.b32.xlu0 %v445_v9, %s2638_s21 }
  0x57   :  { %616 = vrot.lane.b32.xlu1 %v2693_v10, %s2638_s21 }
  0x59   :  { %618 = vrot.lane.b32.xlu0 %v576_v17, %s2638_s21 }
  0x5b   :  { %645 = vrot.lane.b32.xlu1 %v442_v5, %s2639_s22 }
  0x5d   :  { %647 = vrot.lane.b32.xlu0 %v2695_v11, %s2639_s22 }
  0x5f   :  { %649 = vrot.lane.b32.xlu1 %v443_v4, %s2639_s22 }
  0x61   :  { %1765 = vrot.lane.b32.xlu0 %v442_v5, %s2640_s23 }
  0x63   :  { %1767 = vrot.lane.b32.xlu1 %v2695_v11, %s2640_s23 }
  0x65   :  { %1769 = vrot.lane.b32.xlu0 %v443_v4, %s2640_s23 }
  0x67   :  { %1771 = vrot.lane.b32.xlu1 %v2687_v6, %s2640_s23 }
  0x69   :  { %1773 = vrot.lane.b32.xlu0 %v444_v7, %s2640_s23 }
  0x6b   :  { %1775 = vrot.lane.b32.xlu1 %v2690_v8, %s2640_s23 }
  0x6d   :  { %1777 = vrot.lane.b32.xlu0 %v445_v9, %s2640_s23 }
  0x6f   :  { %1779 = vrot.lane.b32.xlu1 %v2693_v10, %s2640_s23 }
  0x71   :  { %1142 = vrot.lane.b32.xlu0 %v442_v5, %s2641_s24 }
  0x73   :  { %1144 = vrot.lane.b32.xlu1 %v2695_v11, %s2641_s24 }
  0x75   :  { %1146 = vrot.lane.b32.xlu0 %v443_v4, %s2641_s24 }
  0x77   :  { %1148 = vrot.lane.b32.xlu1 %v2687_v6, %s2641_s24 }
  0x79   :  { %1150 = vrot.lane.b32.xlu0 %v444_v7, %s2641_s24 }
  0x7b   :  { %1152 = vrot.lane.b32.xlu1 %v2690_v8, %s2641_s24 }
  0x7d   :  { %1154 = vrot.lane.b32.xlu0 %v445_v9, %s2641_s24 }
  0x7f   :  { %1156 = vrot.lane.b32.xlu1 %v2693_v10, %s2641_s24 }
  0x81   :  { %651 = vrot.lane.b32.xlu0 %v2687_v6, %s2639_s22 }
  0x83   :  { %653 = vrot.lane.b32.xlu1 %v444_v7, %s2639_s22 }
  0x85   :  { %655 = vrot.lane.b32.xlu0 %v2690_v8, %s2639_s22 }
  0x87   :  { %657 = vrot.lane.b32.xlu1 %v445_v9, %s2639_s22 }
  0x89   :  { %659 = vrot.lane.b32.xlu0 %v2693_v10, %s2639_s22 }
  0x8b   :  { %661 = vrot.lane.b32.xlu1 %v576_v17, %s2639_s22  ;;  %v3809_v17 = vmov 0 }
  0x8c   :  { %v3810_v17 = vsel %vm2804_vm11, 4294967295, %v3809_v17 }
  0x8d   :  { %742 = vrot.lane.b32.xlu0 %v2681_v1, %s2642_s25  ;;  %3811 = vst [vmem:[#allocation17_spill] sm:$0xff] %v3810_v17 }
  0x8f   :  { %744 = vrot.lane.b32.xlu1 %v2743_v18, %s2642_s25 }
  0x91   :  { %746 = vrot.lane.b32.xlu0 %v2745_v19, %s2642_s25 }
  0x93   :  { %748 = vrot.lane.b32.xlu1 %v2751_v21, %s2642_s25 }
  0x95   :  { %750 = vrot.lane.b32.xlu0 %v2683_v2, %s2642_s25 }
  0x97   :  { %v489_v23 = vpop.permute.xlu0 %488  ;;  %752 = vrot.lane.b32.xlu1 %v2757_v24, %s2642_s25 }
  0x99   :  { %754 = vrot.lane.b32.xlu0 %v2759_v25, %s2642_s25  ;;  %v477_v30 = vpop.permute.xlu1 %476 }
  0x9b   :  { %v473_v31 = vpop.permute.xlu0 %472  ;;  %756 = vrot.lane.b32.xlu1 %v2765_v27, %s2642_s25 }
  0x9d   :  { %758 = vrot.lane.b32.xlu0 %v732_v29, %s2642_s25  ;;  %v479_v37 = vpop.permute.xlu1 %478  ;;  %v3812_v29 = vmov 0 }
  0x9e   :  { %v3813_v29 = vsel %vm2812_vm12, 4294967295, %v3812_v29 }
  0x9f   :  { %v481_v38 = vpop.permute.xlu0 %480  ;;  %3814 = vst [vmem:[#allocation18_spill] sm:$0xff] %v3813_v29 }
  0xa1   :  { %v483_v46 = vpop.permute.xlu1 %482 }
  0xa2   :  { %v495_v20 = vsel %vm490_vm0, %v481_v38, %v483_v46 }
  0xa3   :  { %v485_v48 = vpop.permute.xlu0 %484  ;;  %v511_v28 = vsel %vm2804_vm11, %v495_v20, 0.0 }
  0xa5   :  { %v487_v56 = vpop.permute.xlu1 %486 }
  0xa6   :  { %v347_v56 = vadd.s32 1, %v2772_v45 }
  0xa7   :  { %v475_v57 = vpop.permute.xlu0 %474 }
  0xa8   :  { %v491_v60 = vsel %vm490_vm0, %v473_v31, %v475_v57  ;;  %v492_v7 = vsel %vm490_vm0, %v475_v57, %v477_v30  ;;  %v496_v31 = vsel %vm490_vm0, %v483_v46, %v485_v48  ;;  %vm355_vm0 = vcmp.ge.s32.totalorder %v347_v56, 0 }
  0xa9   :  { %v521_v63 = vpop.permute.xlu1 %520  ;;  %v507_v3 = vsel %vm3758_vm1, %v491_v60, 0.0  ;;  %v508_v15 = vsel %vm2793_vm6, %v492_v7, 0.0  ;;  %v512_v35 = vsel %vm2812_vm12, %v496_v31, 0.0 }
  0xab   :  { %v523_v0 = vpop.permute.xlu0 %522 }
  0xac   :  { %v539_v4 = vsel %vm538_vm2, %v521_v63, %v523_v0 }
  0xad   :  { %v556_v9 = vsel %vm3760_vm5, %v507_v3, %v539_v4  ;;  %v525_v13 = vpop.permute.xlu1 %524  ;;  %v2840_v3 = vadd.s32 4, %v2770_v43 }
  0xae   :  { %564 = vst [vmem:[#allocation3] sm:$0xff] %v556_v9  ;;  %v540_v16 = vsel %vm538_vm2, %v523_v0, %v525_v13  ;;  %v412_v13 = vadd.s32 4, %v2768_v40 }
  0xaf   :  { %v527_v14 = vpop.permute.xlu0 %526  ;;  %v557_v22 = vsel %vm3760_vm5, %v508_v15, %v540_v16  ;;  %vm3761_vm9 = vcmp.lt.s32.totalorder %v2840_v3, 16 }
  0xb0   :  { %565 = vst [vmem:[#allocation3 + $0x8] sm:$0xff] %v557_v22 }
  0xb1   :  { %v529_v23 = vpop.permute.xlu1 %528 }
  0xb3   :  { %v531_v26 = vpop.permute.xlu0 %530 }
  0xb4   :  { %v543_v30 = vsel %vm538_vm2, %v529_v23, %v531_v26 }
  0xb5   :  { %v560_v32 = vsel %vm3760_vm5, %v511_v28, %v543_v30  ;;  %v533_v33 = vpop.permute.xlu1 %532  ;;  %v414_v28 = vadd.s32 4, %v2776_v50 }
  0xb6   :  { %568 = vst [vmem:[#allocation3 + $0x20] sm:$0xff] %v560_v32  ;;  %v544_v36 = vsel %vm538_vm2, %v531_v26, %v533_v33  ;;  %vm363_vm2 = vcmp.lt.s32.totalorder %v347_v56, 16  ;;  %v3817_v26 = vmov 0  ;;  %v415_v33 = vadd.s32 4, %v2782_v55 }
  0xb7   :  { %v535_v34 = vpop.permute.xlu0 %534  ;;  %v561_v37 = vsel %vm3760_vm5, %v512_v35, %v544_v36  ;;  %vm2845_vm7 = vmand %vm355_vm0, %vm363_vm2  ;;  %v3818_v26 = vsel %vm2855_vm10, 4294967295, %v3817_v26  ;;  %vm420_vm0 = vcmp.ge.s32.totalorder %v412_v13, 0  ;;  %vm428_vm2 = vcmp.lt.s32.totalorder %v412_v13, 16 }
  0xb8   :  { %569 = vst [vmem:[#allocation3 + $0x28] sm:$0xff] %v561_v37  ;;  %vm2871_vm3 = vmand %vm420_vm0, %vm428_vm2  ;;  %vm422_vm4 = vcmp.ge.s32.totalorder %v414_v28, 0  ;;  %v416_v56 = vadd.s32 4, %v2787_v61 }
  0xb9   :  { %v537_v38 = vpop.permute.xlu1 %536 }
  0xbb   :  { %v603_v39 = vpop.permute.xlu0 %602 }
  0xbd   :  { %v605_v41 = vpop.permute.xlu1 %604 }
  0xbe   :  { %v621_v60 = vsel %vm3763_vm13, %v603_v39, %v605_v41  ;;  %v413_v39 = vadd.s32 4, %v2774_v49 }
  0xbf   :  { %v607_v42 = vpop.permute.xlu0 %606  ;;  %v637_v4 = vsel %vm3759_vm15, %v621_v60, 0.0  ;;  %vm423_vm15 = vcmp.ge.s32.totalorder %v415_v33, 0 }
  0xc0   :  { %v622_v15 = vsel %vm3763_vm13, %v605_v41, %v607_v42  ;;  %vm421_vm2 = vcmp.ge.s32.totalorder %v413_v39, 0  ;;  %vm424_vm13 = vcmp.ge.s32.totalorder %v416_v56, 0 }
  0xc1   :  { %v609_v44 = vpop.permute.xlu1 %608  ;;  %v638_v30 = vsel %vm2845_vm7, %v622_v15, 0.0 }
  0xc3   :  { %v2823_v47 = vpop.permute.xlu0 %610 }
  0xc5   :  { %v2825_v46 = vpop.permute.xlu1 %612 }
  0xc7   :  { %v2827_v48 = vpop.permute.xlu0 %614 }
  0xc9   :  { %v617_v51 = vpop.permute.xlu1 %616 }
  0xcb   :  { %v619_v53 = vpop.permute.xlu0 %618 }
  0xcd   :  { %v646_v57 = vpop.permute.xlu1 %645 }
  0xcf   :  { %v648_v58 = vpop.permute.xlu0 %647 }
  0xd0   :  { %v664_v62 = vsel %vm3762_vm14, %v646_v57, %v648_v58 }
  0xd1   :  { %v680_v63 = vsel %vm3758_vm1, %v664_v62, 0.0  ;;  %v650_v7 = vpop.permute.xlu1 %649  ;;  %vm430_vm1 = vcmp.lt.s32.totalorder %v414_v28, 16  ;;  %v3823_v62 = vmov 0  ;;  %v2903_v28 = vadd.s32 2, %v2770_v43 }
  0xd2   :  { %v696_v0 = vrot.slane %v680_v63, 4  ;;  %v665_v20 = vsel %vm3762_vm14, %v648_v58, %v650_v7  ;;  %vm2881_vm0 = vmand %vm422_vm4, %vm430_vm1 }
  0xd3   :  { %v1766_v9 = vpop.permute.xlu0 %1765  ;;  %v681_v22 = vsel %vm2793_vm6, %v665_v20, 0.0  ;;  %v3822_v59 = vsel %vm2881_vm0, 4294967295, %v3821_v59 }
  0xd4   :  { %v712_v16 = vsel %vm3760_vm5, %v637_v4, %v696_v0  ;;  %v697_v23 = vrot.slane %v681_v22, 4  ;;  %v379_v4 = vadd.s32 2, %v2772_v45 }
  0xd5   :  { %720 = vst [vmem:[#allocation3 + $0x40] sm:$0xff] %v712_v16  ;;  %v1768_v31 = vpop.permute.xlu1 %1767 }
  0xd6   :  { %v713_v34 = vsel %vm3760_vm5, %v638_v30, %v697_v23  ;;  %v1784_v35 = vsel %vm3764_vm8, %v1766_v9, %v1768_v31  ;;  %vm431_vm5 = vcmp.lt.s32.totalorder %v415_v33, 16  ;;  %v380_v33 = vadd.s32 2, %v2768_v40 }
  0xd7   :  { %v1770_v32 = vpop.permute.xlu0 %1769  ;;  %721 = vst [vmem:[#allocation3 + $0x48] sm:$0xff] %v713_v34  ;;  %v1800_v37 = vsel %vm3761_vm9, %v1784_v35, 0.0  ;;  %vm429_vm9 = vcmp.lt.s32.totalorder %v413_v39, 16  ;;  %vm2885_vm14 = vmand %vm423_vm15, %vm431_vm5  ;;  %vm387_vm15 = vcmp.ge.s32.totalorder %v379_v4, 0  ;;  %v382_v39 = vadd.s32 2, %v2776_v50 }
  0xd8   :  { %v1785_v36 = vsel %vm3764_vm8, %v1768_v31, %v1770_v32  ;;  %v1820_v41 = vrot.slane %v1800_v37, 4  ;;  %v3824_v62 = vsel %vm2885_vm14, 4294967295, %v3823_v62  ;;  %vm2894_vm4 = vmand %vm421_vm2, %vm429_vm9  ;;  %vm395_vm9 = vcmp.lt.s32.totalorder %v379_v4, 16 }
  0xd9   :  { %v1801_v38 = vsel %vm2855_vm10, %v1785_v36, 0.0  ;;  %v1772_v51 = vpop.permute.xlu1 %1771  ;;  %vm3825_vm10 = vcmask 490496   ;;  %vm2915_vm2 = vmand %vm387_vm15, %vm395_vm9  ;;  %vm398_vm15 = vcmp.lt.s32.totalorder %v382_v39, 16 }
  0xda   :  { %v1821_v42 = vrot.slane %v1801_v38, 4  ;;  %v1786_v57 = vsel %vm3764_vm8, %v1770_v32, %v1772_v51  ;;  %1828 = vrot.lane.b32.xlu1 %v1820_v41, %s2643_s26  ;;  %vm432_vm8 = vcmp.lt.s32.totalorder %v416_v56, 16  ;;  %v3832_v38 = vmov 0 }
  0xdb   :  { %v1774_v53 = vpop.permute.xlu0 %1773  ;;  %v1802_v58 = vsel %vm2871_vm3, %v1786_v57, 0.0  ;;  %vm3826_vm3 = vmmov %vm3825_vm10  ;;  %v3833_v38 = vsel %vm2915_vm2, 4294967295, %v3832_v38  ;;  %v381_v57 = vadd.s32 2, %v2774_v49 }
  0xdc   :  { %1830 = vrot.lane.b32.xlu0 %v1821_v42, %s2643_s26  ;;  %v1822_v60 = vrot.slane %v1802_v58, 4  ;;  %v1787_v7 = vsel %vm3825_vm10, %v1772_v51, %v1774_v53  ;;  %vm3827_vm1 = vmmov %vm3826_vm3  ;;  %v383_v42 = vadd.s32 2, %v2782_v55 }
  0xdd   :  { %v1776_v63 = vpop.permute.xlu1 %1775  ;;  %vm440_vm5 = vmand %vm424_vm13, %vm432_vm8  ;;  %v1803_v32 = vsel %vm2894_vm4, %v1787_v7, 0.0  ;;  %vm3770_vm13 = vcmask 244736   ;;  %vm3767_vm8 = vcmp.lt.s32.totalorder %v2903_v28, 16  ;;  %v384_v7 = vadd.s32 2, %v2787_v61 }
  0xde   :  { %v1788_v9 = vsel %vm3826_vm3, %v1774_v53, %v1776_v63  ;;  %1832 = vrot.lane.b32.xlu1 %v1822_v60, %s2643_s26  ;;  %vm3831_vm10 = vmmov %vm3827_vm1  ;;  %v1823_v37 = vrot.slane %v1803_v32, 4  ;;  %vm388_vm3 = vcmp.ge.s32.totalorder %v380_v33, 0  ;;  %vm391_vm9 = vcmp.ge.s32.totalorder %v383_v42, 0 }
  0xdf   :  { %v1778_v0 = vpop.permute.xlu0 %1777  ;;  %v1804_v16 = vsel %vm2881_vm0, %v1788_v9, 0.0  ;;  %vm400_vm0 = vcmp.lt.s32.totalorder %v384_v7, 16 }
  0xe0   :  { %v1789_v13 = vsel %vm3827_vm1, %v1776_v63, %v1778_v0  ;;  %v1824_v22 = vrot.slane %v1804_v16, 4  ;;  %vm396_vm1 = vcmp.lt.s32.totalorder %v380_v33, 16  ;;  %v417_v63 = vadd.s32 4, %v2799_v12 }
  0xe1   :  { %v1805_v20 = vsel %vm2885_vm14, %v1789_v13, 0.0  ;;  %v2905_v30 = vpop.permute.xlu1 %1779  ;;  %vm2930_vm4 = vmand %vm388_vm3, %vm396_vm1  ;;  %vm389_vm1 = vcmp.ge.s32.totalorder %v381_v57, 0  ;;  %vm3840_vm14 = vcmask 244736  }
  0xe2   :  { %v1825_v23 = vrot.slane %v1805_v20, 4  ;;  %3830 = vst [vmem:[#allocation19_spill] sm:$0xff] %v2905_v30  ;;  %v1790_v34 = vsel %vm3831_vm10, %v1778_v0, %v2905_v30  ;;  %1836 = vrot.lane.b32.xlu0 %v1824_v22, %s2643_s26  ;;  %vm399_vm10 = vcmp.lt.s32.totalorder %v383_v42, 16  ;;  %v350_v22 = vadd.s32 1, %v2776_v50 }
  0xe3   :  { %v1143_v31 = vpop.permute.xlu0 %1142  ;;  %v1806_v35 = vsel %vm440_vm5, %v1790_v34, 0.0  ;;  %vm390_vm5 = vcmp.ge.s32.totalorder %v382_v39, 0 }
  0xe4   :  { %1838 = vrot.lane.b32.xlu1 %v1825_v23, %s2643_s26  ;;  %v1826_v36 = vrot.slane %v1806_v35, 4  ;;  %vm2940_vm3 = vmand %vm390_vm5, %vm398_vm15 }
  0xe5   :  { %v1145_v40 = vpop.permute.xlu1 %1144 }
  0xe6   :  { %v1161_v44 = vsel %vm3770_vm13, %v1143_v31, %v1145_v40  ;;  %1840 = vrot.lane.b32.xlu0 %v1826_v36, %s2643_s26  ;;  %v351_v36 = vadd.s32 1, %v2782_v55 }
  0xe7   :  { %v1147_v41 = vpop.permute.xlu0 %1146  ;;  %v1177_v53 = vsel %vm3767_vm8, %v1161_v44, 0.0  ;;  %vm397_vm8 = vcmp.lt.s32.totalorder %v381_v57, 16 }
  0xe8   :  { %v1162_v51 = vsel %vm3770_vm13, %v1145_v40, %v1147_v41  ;;  %1834 = vrot.lane.b32.xlu1 %v1823_v37, %s2643_s26  ;;  %v1197_v58 = vrot.slane %v1177_v53, 4  ;;  %vm2953_vm15 = vmand %vm389_vm1, %vm397_vm8  ;;  %vm358_vm8 = vcmp.ge.s32.totalorder %v350_v22, 0  ;;  %vm359_vm1 = vcmp.ge.s32.totalorder %v351_v36, 0 }
  0xe9   :  { %v1178_v56 = vsel %vm2915_vm2, %v1162_v51, 0.0  ;;  %v1149_v0 = vpop.permute.xlu1 %1148  ;;  %vm2944_vm2 = vmand %vm391_vm9, %vm399_vm10  ;;  %vm366_vm10 = vcmp.lt.s32.totalorder %v350_v22, 16 }
  0xea   :  { %v1198_v60 = vrot.slane %v1178_v56, 4  ;;  %v1163_v9 = vsel %vm3770_vm13, %v1147_v41, %v1149_v0  ;;  %1205 = vrot.lane.b32.xlu0 %v1197_v58, %s2644_s27  ;;  %vm392_vm13 = vcmp.ge.s32.totalorder %v384_v7, 0 }
  0xeb   :  { %v1151_v4 = vpop.permute.xlu0 %1150  ;;  %v1179_v49 = vsel %vm2930_vm4, %v1163_v9, 0.0  ;;  %vm3841_vm4 = vmmov %vm3840_vm14 }
  0xec   :  { %1207 = vrot.lane.b32.xlu1 %v1198_v60, %s2644_s27  ;;  %v1199_v15 = vrot.slane %v1179_v49, 4  ;;  %v1164_v23 = vsel %vm3840_vm14, %v1149_v0, %v1151_v4  ;;  %vm3842_vm5 = vmmov %vm3841_vm4 }
  0xed   :  { %v1153_v61 = vpop.permute.xlu1 %1152  ;;  %vm408_vm14 = vmand %vm392_vm13, %vm400_vm0  ;;  %v1180_v42 = vsel %vm2953_vm15, %v1164_v23, 0.0  ;;  %vm3847_vm0 = vcmask 121856   ;;  %vm367_vm13 = vcmp.lt.s32.totalorder %v351_v36, 16 }
  0xee   :  { %v1165_v31 = vsel %vm3841_vm4, %v1151_v4, %v1153_v61  ;;  %1209 = vrot.lane.b32.xlu0 %v1199_v15, %s2644_s27  ;;  %vm3846_vm9 = vmmov %vm3841_vm4  ;;  %v1200_v56 = vrot.slane %v1180_v42, 4  ;;  %v625_v57 = vsel %vm3847_vm0, %v2823_v47, %v2825_v46 }
  0xef   :  { %v1155_v20 = vpop.permute.xlu0 %1154  ;;  %v1181_v34 = vsel %vm2940_vm3, %v1165_v31, 0.0  ;;  %vm2973_vm4 = vmand %vm358_vm8, %vm366_vm10  ;;  %vm3854_vm8 = vcmask 1043456  }
  0xf0   :  { %v1166_v32 = vsel %vm3842_vm5, %v1153_v61, %v1155_v20  ;;  %v1201_v37 = vrot.slane %v1181_v34, 4  ;;  %vm3850_vm5 = vcmask 7168   ;;  %v641_v47 = vsel %vm2973_vm4, %v625_v57, 0.0  ;;  %vm2984_vm15 = vmand %vm359_vm1, %vm367_vm13 }
  0xf1   :  { %v1182_v35 = vsel %vm2944_vm2, %v1166_v32, 0.0  ;;  %v2962_v40 = vpop.permute.xlu1 %1156  ;;  %vm3856_vm10 = vmmov %vm3854_vm8  ;;  %vm760_vm1 = vcmask 1039360  }
  0xf2   :  { %v1202_v39 = vrot.slane %v1182_v35, 4  ;;  %3845 = vst [vmem:[#allocation20_spill] sm:$0xff] %v2962_v40  ;;  %v1167_v44 = vsel %vm3846_vm9, %v1155_v20, %v2962_v40  ;;  %1213 = vrot.lane.b32.xlu1 %v1201_v37, %s2644_s27  ;;  %vm3855_vm9 = vmmov %vm3850_vm5 }
  0xf3   :  { %v652_v41 = vpop.permute.xlu0 %651  ;;  %v1183_v51 = vsel %vm408_vm14, %v1167_v44, 0.0  ;;  %vm3853_vm14 = vmmov %vm3847_vm0  ;;  %vm3857_vm0 = vcmp.lt.s32.totalorder %v2830_v54, 16 }
  0xf4   :  { %1215 = vrot.lane.b32.xlu0 %v1202_v39, %s2644_s27  ;;  %v1203_v53 = vrot.slane %v1183_v51, 4  ;;  %v626_v49 = vsel %vm3853_vm14, %v2825_v46, %v2827_v48  ;;  %vm3858_vm13 = vmmov %vm3854_vm8 }
  0xf5   :  { %v654_v58 = vpop.permute.xlu1 %653  ;;  %v642_v46 = vsel %vm2984_vm15, %v626_v49, 0.0 }
  0xf6   :  { %1217 = vrot.lane.b32.xlu1 %v1203_v53, %s2644_s27 }
  0xf7   :  { %v656_v60 = vpop.permute.xlu0 %655 }
  0xf8   :  { %v668_v0 = vsel %vm3850_vm5, %v654_v58, %v656_v60  ;;  %1211 = vrot.lane.b32.xlu0 %v1200_v56, %s2644_s27  ;;  %vm3859_vm5 = vmmov %vm3854_vm8  ;;  %v833_v58 = vld [vmem:[#allocation2 + $0x24] sm:$0xf] }
  0xf9   :  { %v684_v4 = vsel %vm2804_vm11, %v668_v0, 0.0  ;;  %v658_v15 = vpop.permute.xlu1 %657  ;;  %v2646_v0 = vmov 1.0   ;;  %vm3860_vm14 = vmmov %vm3859_vm5 }
  0xfa   :  { %v700_v7 = vrot.slane %v684_v4, 4  ;;  %v669_v22 = vsel %vm3855_vm9, %v656_v60, %v658_v15  ;;  %843 = vrot.lane.b32.xlu1 %v2681_v1, %s2645_s28  ;;  %v886_v60 = vcombine.low %v2681_v1, %v2681_v1  ;;  %2251 = vst [vmem:[#allocation3 + $0x304] ss:$8 sm:$0xf] %v2646_v0  ;;  %v3032_v15 = vcombine.low %v2745_v19, %v2745_v19 }
  0xfb   :  { %v660_v61 = vpop.permute.xlu0 %659  ;;  %v685_v23 = vsel %vm2812_vm12, %v669_v22, 0.0  ;;  %2252 = vst [vmem:[#allocation3 + $0x304] ss:$8 sm:$0xf0] %v2646_v0  ;;  %vm3794_vm9 = vcmask 523264   ;;  %vm3800_vm12 = vcmask 1014784  }
  0xfc   :  { %v716_v20 = vsel %vm3854_vm8, %v641_v47, %v700_v7  ;;  %845 = vrot.lane.b32.xlu0 %v2743_v18, %s2645_s28  ;;  %v701_v31 = vrot.slane %v685_v23, 4  ;;  %vm3861_vm8 = vmmov %vm3859_vm5 }
  0xfd   :  { %724 = vst [vmem:[#allocation3 + $0x60] sm:$0xff] %v716_v20  ;;  %v662_v48 = vpop.permute.xlu1 %661 }
  0xfe   :  { %v717_v33 = vsel %vm3856_vm10, %v642_v46, %v701_v31  ;;  %847 = vrot.lane.b32.xlu1 %v2745_v19, %s2645_s28  ;;  %vm3866_vm10 = vmmov %vm3859_vm5 }
  0xff   :  { %v743_v32 = vpop.permute.xlu0 %742  ;;  %725 = vst [vmem:[#allocation3 + $0x68] sm:$0xff] %v717_v33  ;;  %v3068_v33 = vld [vmem:[#allocation2 + $0x14] sm:$0xff] }
 0x100   :  { %849 = vrot.lane.b32.xlu0 %v2751_v21, %s2645_s28 }
 0x101   :  { %v745_v34 = vpop.permute.xlu1 %744 }
 0x102   :  { %851 = vrot.lane.b32.xlu1 %v2683_v2, %s2645_s28  ;;  %v761_v36 = vsel %vm760_vm1, %v743_v32, %v745_v34 }
 0x103   :  { %v747_v35 = vpop.permute.xlu0 %746  ;;  %v777_v39 = vsel %vm3857_vm0, %v761_v36, 0.0  ;;  %v3102_v36 = vld [vmem:[#allocation2] sm:$0xff] }
 0x104   :  { %v762_v37 = vsel %vm760_vm1, %v745_v34, %v747_v35  ;;  %853 = vrot.lane.b32.xlu0 %v2757_v24, %s2645_s28  ;;  %v797_v42 = vrot.slane %v777_v39, 4  ;;  %v3083_v34 = vld [vmem:[#allocation2 + $0x14] sm:$0xff]  ;;  %v3100_v35 = vcombine.low %v2759_v25, %v2759_v25 }
 0x105   :  { %v778_v41 = vsel %vm2845_vm7, %v762_v37, 0.0  ;;  %v749_v51 = vpop.permute.xlu1 %748  ;;  %v3108_v37 = vcombine.high %v3102_v36, %v3102_v36  ;;  %v3112_v39 = vld [vmem:[#allocation2 + $0x10] sm:$0xff] }
 0x106   :  { %v798_v44 = vrot.slane %v778_v41, 4  ;;  %855 = vrot.lane.b32.xlu1 %v2759_v25, %s2645_s28  ;;  %v813_v56 = vsel %vm3858_vm13, %v2681_v1, %v797_v42  ;;  %v3114_v41 = vld [vmem:[#allocation2 + $0x8] sm:$0xff]  ;;  %v3120_v42 = vcombine.high %v3112_v39, %v3112_v39 }
 0x107   :  { %v751_v53 = vpop.permute.xlu0 %750  ;;  %821 = vst [vmem:[#allocation3 + $0x80] sm:$0xff] %v813_v56 }
 0x108   :  { %v814_v57 = vsel %vm3859_vm5, %v2743_v18, %v798_v44  ;;  %857 = vrot.lane.b32.xlu0 %v2765_v27, %s2645_s28  ;;  %v3124_v44 = vld [vmem:[#allocation2 + $0x18] sm:$0xff] }
 0x109   :  { %822 = vst [vmem:[#allocation3 + $0x88] sm:$0xff] %v814_v57  ;;  %v753_v4 = vpop.permute.xlu1 %752 }
 0x10a   :  { %859 = vrot.lane.b32.xlu1 %v833_v58, %s2645_s28  ;;  %v765_v47 = vsel %vm760_vm1, %v751_v53, %v753_v4  ;;  %v3136_v53 = vcombine.low %v3068_v33, %v3068_v33 }
 0x10b   :  { %v755_v7 = vpop.permute.xlu0 %754  ;;  %v781_v61 = vsel %vm2973_vm4, %v765_v47, 0.0 }
 0x10c   :  { %v766_v49 = vsel %vm760_vm1, %v753_v4, %v755_v7  ;;  %891 = vrot.lane.b32.xlu0 %v886_v60, %s2647_s29  ;;  %v801_v22 = vrot.slane %v781_v61, 4  ;;  %vm3867_vm1 = vmmov %vm3859_vm5 }
 0x10d   :  { %v782_v20 = vsel %vm2984_vm15, %v766_v49, 0.0  ;;  %v757_v31 = vpop.permute.xlu1 %756  ;;  %vm3868_vm0 = vmmov %vm3867_vm1 }
 0x10e   :  { %v802_v23 = vrot.slane %v782_v20, 4  ;;  %893 = vrot.lane.b32.xlu1 %v2681_v1, %s2647_s29  ;;  %v817_v48 = vsel %vm3860_vm14, %v2683_v2, %v801_v22  ;;  %v3058_v1 = vld [vmem:[#allocation2 + $0x4] sm:$0xff]  ;;  %vm3869_vm13 = vmmov %vm3868_vm0 }
 0x10f   :  { %v759_v46 = vpop.permute.xlu0 %758  ;;  %825 = vst [vmem:[#allocation3 + $0xa0] sm:$0xff] %v817_v48  ;;  %v3064_v2 = vcombine.high %v3058_v1, %v3058_v1  ;;  %v3130_v51 = vcombine.low %v3058_v1, %v3058_v1  ;;  %v3184_v31 = vld [vmem:[#allocation2 + $0x8] sm:$0xff]  ;;  %vm3870_vm5 = vmmov %vm3868_vm0 }
 0x110   :  { %v818_v32 = vsel %vm3861_vm8, %v2757_v24, %v802_v23  ;;  %895 = vrot.lane.b32.xlu0 %v3032_v15, %s2647_s29  ;;  %vm3871_vm14 = vmmov %vm3868_vm0  ;;  %vm3793_vm8 = vcmask 924672  }
 0x111   :  { %826 = vst [vmem:[#allocation3 + $0xa8] sm:$0xff] %v818_v32 }
 0x112   :  { %2202 = vrot.lane.b32.xlu1 %v2743_v18, %s2640_s23 }
 0x114   :  { %2204 = vrot.lane.b32.xlu0 %v2745_v19, %s2640_s23 }
 0x116   :  { %2210 = vrot.lane.b32.xlu1 %v2757_v24, %s2640_s23 }
 0x118   :  { %2212 = vrot.lane.b32.xlu0 %v2759_v25, %s2640_s23 }
 0x11a   :  { %1994 = vrot.lane.b32.xlu1 %v2743_v18, %s2648_s30  ;;  %v3074_v18 = vcombine.high %v3068_v33, %v3068_v33 }
 0x11c   :  { %1996 = vrot.lane.b32.xlu0 %v2745_v19, %s2648_s30 }
 0x11e   :  { %2002 = vrot.lane.b32.xlu1 %v2757_v24, %s2648_s30  ;;  %v2552_v24 = vld [vmem:[#allocation2 + $0x4] sm:$0xff] }
 0x120   :  { %2004 = vrot.lane.b32.xlu0 %v2759_v25, %s2648_s30 }
 0x122   :  { %2091 = vrot.lane.b32.xlu1 %v3064_v2, %s2649_s3 }
 0x124   :  { %2093 = vrot.lane.b32.xlu0 %v2745_v19, %s2649_s3 }
 0x126   :  { %2099 = vrot.lane.b32.xlu1 %v3074_v18, %s2649_s3 }
 0x128   :  { %2101 = vrot.lane.b32.xlu0 %v2759_v25, %s2649_s3 }
 0x12a   :  { %2200 = vrot.lane.b32.xlu1 %v2552_v24, %s2640_s23 }
 0x12c   :  { %2208 = vrot.lane.b32.xlu0 %v3083_v34, %s2640_s23 }
 0x12e   :  { %1992 = vrot.lane.b32.xlu1 %v2552_v24, %s2648_s30 }
 0x130   :  { %2000 = vrot.lane.b32.xlu0 %v3083_v34, %s2648_s30 }
 0x132   :  { %2089 = vrot.lane.b32.xlu1 %v3058_v1, %s2649_s3 }
 0x134   :  { %2097 = vrot.lane.b32.xlu0 %v3068_v33, %s2649_s3 }
 0x136   :  { %2138 = vrot.lane.b32.xlu1 %v3058_v1, %s2643_s26 }
 0x138   :  { %2140 = vrot.lane.b32.xlu0 %v3032_v15, %s2643_s26 }
 0x13a   :  { %2146 = vrot.lane.b32.xlu1 %v3068_v33, %s2643_s26 }
 0x13c   :  { %2148 = vrot.lane.b32.xlu0 %v3100_v35, %s2643_s26 }
 0x13e   :  { %1937 = vrot.lane.b32.xlu1 %v3108_v37, %s2650_s4 }
 0x140   :  { %1939 = vrot.lane.b32.xlu0 %v3114_v41, %s2650_s4 }
 0x142   :  { %1945 = vrot.lane.b32.xlu1 %v3120_v42, %s2650_s4 }
 0x144   :  { %1947 = vrot.lane.b32.xlu0 %v3124_v44, %s2650_s4 }
 0x146   :  { %2136 = vrot.lane.b32.xlu1 %v3130_v51, %s2643_s26 }
 0x148   :  { %2144 = vrot.lane.b32.xlu0 %v3136_v53, %s2643_s26 }
 0x14a   :  { %1935 = vrot.lane.b32.xlu1 %v3102_v36, %s2650_s4 }
 0x14c   :  { %1943 = vrot.lane.b32.xlu0 %v3112_v39, %s2650_s4  ;;  %v1829_v56 = vpop.permute.xlu1 %1828 }
 0x14e   :  { %1654 = vrot.lane.b32.xlu1 %v3108_v37, %s2649_s3  ;;  %v1831_v57 = vpop.permute.xlu0 %1830 }
 0x14f   :  { %v1845_v49 = vsel %vm3794_vm9, %v1829_v56, %v1831_v57 }
 0x150   :  { %1656 = vrot.lane.b32.xlu0 %v3114_v41, %s2649_s3  ;;  %v3150_v58 = vpop.permute.xlu1 %1832 }
 0x151   :  { %3862 = vst [vmem:[#allocation21_spill] sm:$0xff] %v3150_v58  ;;  %v1846_v61 = vsel %vm3794_vm9, %v1831_v57, %v3150_v58  ;;  %v3199_v57 = vld [vmem:[#allocation2 + $0x18] sm:$0xff] }
 0x152   :  { %1662 = vrot.lane.b32.xlu1 %v3120_v42, %s2649_s3  ;;  %v1863_v46 = vsel %vm3867_vm1, %v3184_v31, %v1846_v61  ;;  %vm3874_vm1 = vcmp.ge.s32.totalorder %v2779_v52, 0 }
 0x154   :  { %1664 = vrot.lane.b32.xlu0 %v3124_v44, %s2649_s3  ;;  %v1837_v0 = vpop.permute.xlu0 %1836 }
 0x156   :  { %v1839_v60 = vpop.permute.xlu1 %1838  ;;  %1652 = vrot.lane.b32.xlu1 %v3102_v36, %s2649_s3 }
 0x157   :  { %v1849_v23 = vsel %vm3794_vm9, %v1837_v0, %v1839_v60 }
 0x158   :  { %1660 = vrot.lane.b32.xlu0 %v3112_v39, %s2649_s3  ;;  %v3160_v4 = vpop.permute.xlu0 %1840  ;;  %v1866_v24 = vsel %vm3868_vm0, %v2690_v8, %v1849_v23 }
 0x159   :  { %3863 = vst [vmem:[#allocation22_spill] sm:$0xff] %v3160_v4  ;;  %v1850_v48 = vsel %vm3794_vm9, %v1839_v60, %v3160_v4 }
 0x15a   :  { %v3162_v7 = vpop.permute.xlu1 %1834  ;;  %1581 = vrot.lane.b32.xlu1 %v3064_v2, %s2651_s5 }
 0x15b   :  { %3864 = vst [vmem:[#allocation23_spill] sm:$0xff] %v3162_v7 }
 0x15c   :  { %1583 = vrot.lane.b32.xlu0 %v2745_v19, %s2651_s5  ;;  %v3168_v47 = vpop.permute.xlu0 %1205  ;;  %v1862_v19 = vsel %vm3866_vm10, %v2695_v11, %v1845_v49  ;;  %v1867_v49 = vsel %vm3869_vm13, %v3199_v57, %v1850_v48  ;;  %vm3791_vm10 = vcmask 916480   ;;  %vm3876_vm13 = vmmov %vm3868_vm0 }
 0x15e   :  { %1589 = vrot.lane.b32.xlu1 %v3074_v18, %s2651_s5  ;;  %v3177_v20 = vpop.permute.xlu1 %1207 }
 0x160   :  { %1591 = vrot.lane.b32.xlu0 %v2759_v25, %s2651_s5  ;;  %v3179_v22 = vpop.permute.xlu0 %1209 }
 0x161   :  { %3865 = vst [vmem:[#allocation24_spill] sm:$0xff] %v3179_v22 }
 0x162   :  { %1881 = vrot.lane.b32.xlu1 %v1862_v19, %s2643_s26  ;;  %v1848_v19 = vsel %vm3794_vm9, %v3162_v7, %v1837_v0  ;;  %v3226_v7 = vld [vmem:[#allocation2 + $0xc] sm:$0xff] }
 0x163   :  { %3872 = vst [vmem:[#allocation25_spill] sm:$0xff] %v3226_v7 }
 0x164   :  { %1883 = vrot.lane.b32.xlu0 %v1863_v46, %s2643_s26  ;;  %v3192_v25 = vpop.permute.xlu1 %1213 }
 0x166   :  { %v3194_v32 = vpop.permute.xlu0 %1215  ;;  %1889 = vrot.lane.b32.xlu1 %v1866_v24, %s2643_s26  ;;  %v3214_v24 = vld [vmem:[#allocation2] sm:$0xff] }
 0x167   :  { %v1861_v48 = vsel %vm3870_vm5, %v3214_v24, %v1829_v56  ;;  %vm3877_vm5 = vcmask 490496  }
 0x168   :  { %1891 = vrot.lane.b32.xlu0 %v1867_v49, %s2643_s26  ;;  %v3204_v61 = vpop.permute.xlu1 %1217  ;;  %v3219_v49 = vld [vmem:[#allocation2 + $0x10] sm:$0xff] }
 0x169   :  { %v1865_v4 = vsel %vm3871_vm14, %v3219_v49, %v1848_v19  ;;  %v3236_v19 = vld [vmem:[#allocation2 + $0x1c] sm:$0xff]  ;;  %vm3879_vm14 = vmmov %vm3877_vm5 }
 0x16a   :  { %v3206_v60 = vpop.permute.xlu0 %1211  ;;  %1579 = vrot.lane.b32.xlu1 %v3058_v1, %s2651_s5  ;;  %3873 = vst [vmem:[#allocation26_spill] sm:$0xff] %v3236_v19 }
 0x16c   :  { %1587 = vrot.lane.b32.xlu0 %v3068_v33, %s2651_s5  ;;  %v844_v23 = vpop.permute.xlu1 %843 }
 0x16e   :  { %v846_v46 = vpop.permute.xlu0 %845  ;;  %1879 = vrot.lane.b32.xlu1 %v1861_v48, %s2643_s26 }
 0x16f   :  { %v862_v10 = vsel %vm3793_vm8, %v844_v23, %v846_v46 }
 0x170   :  { %1887 = vrot.lane.b32.xlu0 %v1865_v4, %s2643_s26  ;;  %v848_v0 = vpop.permute.xlu1 %847  ;;  %v878_v30 = vsel %vm3874_vm1, %v862_v10, 0.0  ;;  %vm3880_vm1 = vnez %v3824_v62 }
 0x171   :  { %v863_v6 = vsel %vm3793_vm8, %v846_v46, %v848_v0 }
 0x172   :  { %v850_v58 = vpop.permute.xlu0 %849  ;;  %1372 = vrot.lane.b32.xlu1 %v3064_v2, %s2652_s6 }
 0x174   :  { %1374 = vrot.lane.b32.xlu0 %v3226_v7, %s2652_s6  ;;  %v3230_v56 = vpop.permute.xlu1 %851 }
 0x176   :  { %v3232_v48 = vpop.permute.xlu0 %853  ;;  %1380 = vrot.lane.b32.xlu1 %v3074_v18, %s2652_s6 }
 0x178   :  { %1382 = vrot.lane.b32.xlu0 %v3236_v19, %s2652_s6  ;;  %v3240_v58 = vpop.permute.xlu1 %855 }
 0x17a   :  { %v858_v4 = vpop.permute.xlu0 %857  ;;  %1469 = vrot.lane.b32.xlu1 %v3064_v2, %s2653_s7 }
 0x17c   :  { %1471 = vrot.lane.b32.xlu0 %v3226_v7, %s2653_s7  ;;  %v860_v27 = vpop.permute.xlu1 %859 }
 0x17d   :  { %v879_v27 = vsel %vm2793_vm6, %v863_v6, 0.0  ;;  %vm3878_vm6 = vnez %v3818_v26 }
 0x17e   :  { %v892_v21 = vpop.permute.xlu0 %891  ;;  %1477 = vrot.lane.b32.xlu1 %v3074_v18, %s2653_s7 }
 0x180   :  { %1479 = vrot.lane.b32.xlu0 %v3236_v19, %s2653_s7  ;;  %v894_v4 = vpop.permute.xlu1 %893 }
 0x181   :  { %v910_v40 = vsel %vm3791_vm10, %v892_v21, %v894_v4 }
 0x182   :  { %v896_v7 = vpop.permute.xlu0 %895  ;;  %v3258_v23 = vsel %vm3868_vm0, %v878_v30, %v910_v40  ;;  %1370 = vrot.lane.b32.xlu1 %v3058_v1, %s2652_s6  ;;  %vm2310_vm0 = vcmask 1044480  }
 0x183   :  { %3875 = vst [vmem:[#allocation27_spill] sm:$0xff] %v3258_v23  ;;  %v911_v17 = vsel %vm3791_vm10, %v894_v4, %v896_v7  ;;  %vm3884_vm10 = vnez %v3822_v59 }
 0x184   :  { %v3264_v46 = vsel %vm3876_vm13, %v879_v27, %v911_v17  ;;  %1378 = vrot.lane.b32.xlu0 %v3068_v33, %s2652_s6  ;;  %v2203_v10 = vpop.permute.xlu1 %2202  ;;  %vm3881_vm13 = vmmov %vm3877_vm5 }
 0x186   :  { %v2205_v21 = vpop.permute.xlu0 %2204  ;;  %1467 = vrot.lane.b32.xlu1 %v3058_v1, %s2653_s7 }
 0x187   :  { %v2219_v52 = vsel %vm3877_vm5, %v2203_v10, %v2205_v21  ;;  %vm3882_vm5 = vcmp.lt.s32.totalorder %v2840_v3, 16 }
 0x188   :  { %v2235_v6 = vsel %vm3878_vm6, %v2219_v52, 0.0  ;;  %1475 = vrot.lane.b32.xlu0 %v3068_v33, %s2653_s7  ;;  %v2211_v5 = vpop.permute.xlu1 %2210 }
 0x189   :  { %2243 = vst [vmem:[#allocation3 + $0x308] sm:$0xf] %v2235_v6 }
 0x18a   :  { %v2213_v17 = vpop.permute.xlu0 %2212  ;;  %1517 = vrot.lane.b32.xlu1 %v3058_v1, %s2644_s27 }
 0x18b   :  { %v2223_v30 = vsel %vm3879_vm14, %v2211_v5, %v2213_v17  ;;  %vm3883_vm14 = vmmov %vm3881_vm13 }
 0x18c   :  { %v2239_v40 = vsel %vm3880_vm1, %v2223_v30, 0.0  ;;  %1519 = vrot.lane.b32.xlu0 %v3032_v15, %s2644_s27  ;;  %v3282_v7 = vpop.permute.xlu1 %1994 }
 0x18d   :  { %2247 = vst [vmem:[#allocation3 + $0x328] sm:$0xf] %v2239_v40 }
 0x18e   :  { %v3284_v0 = vpop.permute.xlu0 %1996  ;;  %1525 = vrot.lane.b32.xlu1 %v3068_v33, %s2644_s27 }
 0x190   :  { %1527 = vrot.lane.b32.xlu0 %v3100_v35, %s2644_s27  ;;  %v2303_v4 = vld [vmem:[#allocation3 + $0x308] sm:$0x1f]  ;;  %v3291_v27 = vpop.permute.xlu1 %2002 }
 0x191   :  { %2488 = vmatprep.subr.msk.mxu0 %vm2310_vm0, %v2303_v4 }
 0x192   :  { %v3293_v21 = vpop.permute.xlu0 %2004  ;;  %1315 = vrot.lane.b32.xlu1 %v3108_v37, %s2654_s8 }
 0x194   :  { %1317 = vrot.lane.b32.xlu0 %v3114_v41, %s2654_s8  ;;  %v2305_v15 = vld [vmem:[#allocation3 + $0x328] sm:$0x1f]  ;;  %v3300_v52 = vpop.permute.xlu1 %2091 }
 0x195   :  { %2491 = vmatprep.subr.msk.mxu1 %vm2310_vm0, %v2305_v15 }
 0x196   :  { %v2094_v6 = vpop.permute.xlu0 %2093  ;;  %1323 = vrot.lane.b32.xlu1 %v3120_v42, %s2654_s8 }
 0x198   :  { %1325 = vrot.lane.b32.xlu0 %v3124_v44, %s2654_s8  ;;  %v3306_v17 = vpop.permute.xlu1 %2099 }
 0x19a   :  { %v2102_v30 = vpop.permute.xlu0 %2101  ;;  %1515 = vrot.lane.b32.xlu1 %v3130_v51, %s2644_s27  ;;  %v251_v51 = vadd.s32 4294967292, %v2772_v45 }
 0x19c   :  { %1523 = vrot.lane.b32.xlu0 %v3136_v53, %s2644_s27  ;;  %v2201_v40 = vpop.permute.xlu1 %2200 }
 0x19d   :  { %v2218_v4 = vsel %vm3881_vm13, %v2201_v40, %v2203_v10  ;;  %vm259_vm13 = vcmp.ge.s32.totalorder %v251_v51, 0 }
 0x19e   :  { %v2209_v15 = vpop.permute.xlu0 %2208  ;;  %v2234_v19 = vsel %vm3882_vm5, %v2218_v4, 0.0  ;;  %1313 = vrot.lane.b32.xlu1 %v3102_v36, %s2654_s8  ;;  %vm267_vm5 = vcmp.lt.s32.totalorder %v251_v51, 16 }
 0x19f   :  { %v2222_v23 = vsel %vm3883_vm14, %v2209_v15, %v2211_v5  ;;  %2242 = vst [vmem:[#allocation3 + $0x300] sm:$0xf] %v2234_v19  ;;  %vm3801_vm14 = vcmask 556032   ;;  %v255_v19 = vadd.s32 4294967292, %v2782_v55  ;;  %vm3336_vm8 = vmand %vm259_vm13, %vm267_vm5  ;;  %vm3887_vm13 = vcmask 523264  }
 0x1a0   :  { %v2238_v29 = vsel %vm3884_vm10, %v2222_v23, 0.0  ;;  %1321 = vrot.lane.b32.xlu0 %v3112_v39, %s2654_s8  ;;  %v3323_v53 = vpop.permute.xlu1 %1992  ;;  %v2112_v51 = vsel %vm3801_vm14, %v3306_v17, %v2102_v30 }
 0x1a1   :  { %2246 = vst [vmem:[#allocation3 + $0x320] sm:$0xf] %v2238_v29  ;;  %vm263_vm9 = vcmp.ge.s32.totalorder %v255_v19, 0  ;;  %vm271_vm11 = vcmp.lt.s32.totalorder %v255_v19, 16  ;;  %v2011_v62 = vsel %vm3800_vm12, %v3323_v53, %v3282_v7 }
 0x1a2   :  { %v3325_v10 = vpop.permute.xlu0 %2000  ;;  %1031 = vrot.lane.b32.xlu1 %v3108_v37, %s2655_s9  ;;  %v2108_v37 = vsel %vm3801_vm14, %v3300_v52, %v2094_v6  ;;  %vm3354_vm5 = vmand %vm263_vm9, %vm271_vm11  ;;  %vm3802_vm11 = vcmask 785408  }
 0x1a3   :  { %v2124_v15 = vsel %vm3336_vm8, %v2108_v37, 0.0  ;;  %vm3891_vm9 = vmmov %vm3887_vm13 }
 0x1a4   :  { %1033 = vrot.lane.b32.xlu0 %v3114_v41, %s2655_s9  ;;  %v2090_v23 = vpop.permute.xlu1 %2089 }
 0x1a6   :  { %v3332_v5 = vpop.permute.xlu0 %2097  ;;  %1039 = vrot.lane.b32.xlu1 %v3120_v42, %s2655_s9  ;;  %v2302_v29 = vld [vmem:[#allocation3 + $0x300] sm:$0x1f] }
 0x1a7   :  { %2489 = vmatpush1.msk.msra.mxu0 %vm2310_vm0, %v2302_v29  ;;  %v2012_v29 = vsel %vm3800_vm12, %v3282_v7, %v3284_v0  ;;  %v254_v0 = vadd.s32 4294967292, %v2776_v50  ;;  %v1227_v7 = vsel %vm3802_vm11, %v3194_v32, %v3204_v61 }
 0x1a8   :  { %1041 = vrot.lane.b32.xlu0 %v3124_v44, %s2655_s9  ;;  %v2304_v41 = vld [vmem:[#allocation3 + $0x320] sm:$0x1f]  ;;  %v3346_v4 = vpop.permute.xlu1 %2138 }
 0x1a9   :  { %2492 = vmatpush1.msk.msra.mxu1 %vm2310_vm0, %v2304_v41  ;;  %vm3890_vm0 = vcmask 1043456   ;;  %v3366_v41 = vld [vmem:[#allocation2 + $0xc] sm:$0xff] }
 0x1aa   :  { %v2141_v42 = vpop.permute.xlu0 %2140  ;;  %1029 = vrot.lane.b32.xlu1 %v3102_v36, %s2655_s9 }
 0x1ab   :  { %v2155_v6 = vsel %vm3887_vm13, %v3346_v4, %v2141_v42  ;;  %v2128_v42 = vsel %vm3354_vm5, %v2112_v51, 0.0  ;;  %vm3892_vm13 = vmmov %vm3890_vm0  ;;  %v3383_v51 = vadd.s32 4294967292, %v2770_v43 }
 0x1ac   :  { %v2171_v19 = vsel %vm3890_vm0, %v2124_v15, %v2155_v6  ;;  %1037 = vrot.lane.b32.xlu0 %v3112_v39, %s2655_s9  ;;  %v2147_v37 = vpop.permute.xlu1 %2146  ;;  %v2028_v39 = vsel %vm3878_vm6, %v2012_v29, 0.0  ;;  %vm3797_vm0 = vcmask 31744   ;;  %v2016_v6 = vsel %vm3800_vm12, %v3291_v27, %v3293_v21 }
 0x1ad   :  { %2331 = vmatprep.subr.mxu0 %v2171_v19  ;;  %v1222_v29 = vsel %vm3802_vm11, %v3168_v47, %v3177_v20  ;;  %v1223_v21 = vsel %vm3802_vm11, %v3177_v20, %v3179_v22  ;;  %vm3896_vm6 = vcmask 31744  }
 0x1ae   :  { %v2149_v36 = vpop.permute.xlu0 %2148  ;;  %958 = vrot.lane.b32.xlu1 %v3064_v2, %s2656_s10  ;;  %v3385_v2 = vld [vmem:[#allocation2 + $0x1c] sm:$0xff] }
 0x1af   :  { %v2159_v30 = vsel %vm3891_vm9, %v2147_v37, %v2149_v36  ;;  %3893 = vst [vmem:[#allocation28_spill] sm:$0xff] %v3385_v2  ;;  %v2044_v36 = vrot.slane %v2028_v39, 4  ;;  %vm258_vm9 = vcmp.ge.s32.totalorder %v3383_v51, 0  ;;  %v2107_v39 = vsel %vm3801_vm14, %v2090_v23, %v3300_v52 }
 0x1b0   :  { %v2175_v15 = vsel %vm3892_vm13, %v2128_v42, %v2159_v30  ;;  %960 = vrot.lane.b32.xlu0 %v3366_v41, %s2656_s10  ;;  %v1938_v19 = vpop.permute.xlu1 %1937  ;;  %v2032_v30 = vsel %vm3880_vm1, %v2016_v6, 0.0  ;;  %vm270_vm13 = vcmp.lt.s32.totalorder %v254_v0, 16  ;;  %v2111_v23 = vsel %vm3801_vm14, %v3332_v5, %v3306_v17 }
 0x1b1   :  { %2402 = vmatprep.subr.mxu1 %v2175_v15  ;;  %v2048_v22 = vrot.slane %v2032_v30, 4 }
 0x1b2   :  { %v1940_v26 = vpop.permute.xlu0 %1939  ;;  %966 = vrot.lane.b32.xlu1 %v3074_v18, %s2656_s10 }
 0x1b3   :  { %v1955_v42 = vsel %vm3797_vm0, %v1938_v19, %v1940_v26  ;;  %vm3894_vm0 = vcmask 1043456  }
 0x1b4   :  { %v1971_v15 = vsel %vm3336_vm8, %v1955_v42, 0.0  ;;  %968 = vrot.lane.b32.xlu0 %v3385_v2, %s2656_s10  ;;  %v1946_v26 = vpop.permute.xlu1 %1945  ;;  %vm3895_vm1 = vmmov %vm3894_vm0  ;;  %v1226_v42 = vsel %vm3802_vm11, %v3192_v25, %v3194_v32  ;;  %v1240_v52 = vsel %vm3894_vm0, %v3184_v31, %v1223_v21 }
 0x1b5   :  { %v2060_v18 = vsel %vm3894_vm0, %v1971_v15, %v2044_v36  ;;  %v1239_v6 = vsel %vm3895_vm1, %v2695_v11, %v1222_v29  ;;  %v2123_v11 = vsel %vm258_vm9, %v2107_v39, 0.0  ;;  %vm3897_vm1 = vcmp.ge.s32.totalorder %v254_v0, 0 }
 0x1b6   :  { %v1948_v20 = vpop.permute.xlu0 %1947  ;;  %1258 = vrot.lane.b32.xlu1 %v1239_v6, %s2657_s11  ;;  %vm3424_vm12 = vmand %vm3897_vm1, %vm270_vm13  ;;  %vm3901_vm0 = vcmask 1014784   ;;  %vm3902_vm13 = vcmask 1043456   ;;  %vm3903_vm1 = vcmask 523264  }
 0x1b7   :  { %v1959_v2 = vsel %vm3896_vm6, %v1946_v26, %v1948_v20  ;;  %vm3900_vm6 = vcmp.lt.s32.totalorder %v2840_v3, 16  ;;  %v2015_v32 = vsel %vm3901_vm0, %v3325_v10, %v3291_v27  ;;  %vm3904_vm14 = vmmov %vm3902_vm13  ;;  %v2127_v5 = vsel %vm3424_vm12, %v2111_v23, 0.0  ;;  %v3491_v23 = vld [vmem:[#allocation2 + $0x20] sm:$0xf] }
 0x1b8   :  { %v1975_v29 = vsel %vm3354_vm5, %v1959_v2, 0.0  ;;  %1260 = vrot.lane.b32.xlu0 %v1240_v52, %s2657_s11  ;;  %v2027_v31 = vsel %vm3900_vm6, %v2011_v62, 0.0  ;;  %v2137_v36 = vpop.permute.xlu1 %2136  ;;  %v1243_v17 = vsel %vm3904_vm14, %v2690_v8, %v1226_v42  ;;  %vm3905_vm11 = vmmov %vm3902_vm13  ;;  %v2031_v10 = vsel %vm3884_vm10, %v2015_v32, 0.0 }
 0x1b9   :  { %v2064_v0 = vsel %vm3902_vm13, %v1975_v29, %v2048_v22  ;;  %v2154_v21 = vsel %vm3903_vm1, %v2137_v36, %v3346_v4  ;;  %vm3906_vm6 = vmmov %vm3903_vm1  ;;  %v2043_v27 = vrot.slane %v2027_v31, 4  ;;  %vm3909_vm14 = vcmask 31744  }
 0x1ba   :  { %v2145_v30 = vpop.permute.xlu0 %2144  ;;  %v2170_v3 = vsel %vm3905_vm11, %v2123_v11, %v2154_v21  ;;  %1266 = vrot.lane.b32.xlu1 %v1243_v17, %s2657_s11  ;;  %vm3907_vm0 = vmmov %vm3905_vm11  ;;  %v2047_v39 = vrot.slane %v2031_v10, 4  ;;  %vm3911_vm10 = vcmask 785408  }
 0x1bb   :  { %v2158_v2 = vsel %vm3906_vm6, %v2145_v30, %v2147_v37  ;;  %v1244_v22 = vsel %vm3907_vm0, %v3199_v57, %v1227_v7  ;;  %vm3908_vm13 = vmmov %vm3907_vm0  ;;  %2332 = vmatpush1.msra.mxu0 %v2170_v3  ;;  %v1225_v59 = vsel %vm3911_vm10, %v3206_v60, %v3192_v25  ;;  %v3484_v7 = vld [vmem:[#allocation2 + $0x20] sm:$0xf] }
 0x1bc   :  { %v2174_v4 = vsel %vm3908_vm13, %v2127_v5, %v2158_v2  ;;  %1268 = vrot.lane.b32.xlu0 %v1244_v22, %s2657_s11  ;;  %v1936_v8 = vpop.permute.xlu1 %1935  ;;  %2333 = vmatprep.subr.mxu0 %v2060_v18  ;;  %vm3910_vm11 = vmmov %vm3909_vm14 }
 0x1bd   :  { %2403 = vmatpush1.msra.mxu1 %v2174_v4  ;;  %v1954_v15 = vsel %vm3909_vm14, %v1936_v8, %v1938_v19  ;;  %vm3912_vm1 = vmmov %vm3907_vm0  ;;  %vm3915_vm14 = vcmask 556032  }
 0x1be   :  { %v1944_v37 = vpop.permute.xlu0 %1943  ;;  %2404 = vmatprep.subr.mxu1 %v2064_v0  ;;  %v1970_v57 = vsel %vm258_vm9, %v1954_v15, 0.0  ;;  %956 = vrot.lane.b32.xlu1 %v3058_v1, %s2656_s10  ;;  %vm3913_vm6 = vmmov %vm3907_vm0  ;;  %v1238_v1 = vsel %vm3907_vm0, %v3214_v24, %v3168_v47 }
 0x1bf   :  { %v1958_v62 = vsel %vm3910_vm11, %v1944_v37, %v1946_v26  ;;  %v2059_v20 = vsel %vm3912_vm1, %v1970_v57, %v2043_v27  ;;  %vm3914_vm13 = vmmov %vm3907_vm0  ;;  %vm1597_vm11 = vcmask 769024  }
 0x1c0   :  { %v1974_v19 = vsel %vm3424_vm12, %v1958_v62, 0.0  ;;  %964 = vrot.lane.b32.xlu0 %v3068_v33, %s2656_s10  ;;  %v1655_v6 = vpop.permute.xlu1 %1654  ;;  %2334 = vmatpush1.msra.mxu0 %v2059_v20  ;;  %v1242_v25 = vsel %vm3914_vm13, %v3219_v49, %v1225_v59  ;;  %v888_v33 = vcombine.low %v3083_v34, %v3083_v34  ;;  %vm3916_vm10 = vmmov %vm3915_vm14 }
 0x1c1   :  { %v2063_v18 = vsel %vm3913_vm6, %v1974_v19, %v2047_v39  ;;  %vm3918_vm1 = vmmov %vm3907_vm0 }
 0x1c2   :  { %v1657_v26 = vpop.permute.xlu0 %1656  ;;  %2405 = vmatpush1.msra.mxu1 %v2063_v18  ;;  %1256 = vrot.lane.b32.xlu1 %v1238_v1, %s2657_s11  ;;  %vm3919_vm6 = vmmov %vm3907_vm0 }
 0x1c3   :  { %v1672_v47 = vsel %vm3915_vm14, %v1655_v6, %v1657_v26  ;;  %vm3920_vm0 = vmmov %vm3916_vm10 }
 0x1c4   :  { %1264 = vrot.lane.b32.xlu0 %v1242_v25, %s2657_s11  ;;  %v1663_v42 = vpop.permute.xlu1 %1662  ;;  %v1688_v49 = vsel %vm3336_vm8, %v1672_v47, 0.0  ;;  %vm3917_vm8 = vnez %v3833_v38  ;;  %vm3922_vm13 = vmmov %vm3920_vm0 }
 0x1c5   :  { %v1704_v31 = vrot.slane %v1688_v49, 4 }
 0x1c6   :  { %v1665_v52 = vpop.permute.xlu0 %1664  ;;  %901 = vrot.lane.b32.xlu1 %v3083_v34, %s2647_s29 }
 0x1c7   :  { %v1676_v34 = vsel %vm3916_vm10, %v1663_v42, %v1665_v52  ;;  %vm3924_vm10 = vcmp.lt.s32.totalorder %v2903_v28, 16 }
 0x1c8   :  { %903 = vrot.lane.b32.xlu0 %v3100_v35, %s2647_s29  ;;  %v1653_v24 = vpop.permute.xlu1 %1652  ;;  %v1692_v40 = vsel %vm3354_vm5, %v1676_v34, 0.0  ;;  %vm3921_vm5 = vcmask 523264  }
 0x1c9   :  { %v1708_v17 = vrot.slane %v1692_v40, 4  ;;  %v1671_v27 = vsel %vm3920_vm0, %v1653_v24, %v1655_v6  ;;  %vm3923_vm14 = vmmov %vm3921_vm5 }
 0x1ca   :  { %v1661_v11 = vpop.permute.xlu0 %1660  ;;  %899 = vrot.lane.b32.xlu1 %v888_v33, %s2647_s29  ;;  %v1687_v4 = vsel %vm258_vm9, %v1671_v27, 0.0  ;;  %vm3925_vm9 = vmmov %vm3918_vm1 }
 0x1cb   :  { %v1675_v8 = vsel %vm3922_vm13, %v1661_v11, %v1663_v42  ;;  %v1703_v57 = vrot.slane %v1687_v4, 4 }
 0x1cc   :  { %1158 = vrot.lane.b32.xlu0 %v3484_v7, %s2641_s24  ;;  %v1582_v35 = vpop.permute.xlu1 %1581  ;;  %v1691_v62 = vsel %vm3424_vm12, %v1675_v8, 0.0  ;;  %vm3926_vm12 = vmmov %vm3921_vm5 }
 0x1cd   :  { %v1707_v18 = vrot.slane %v1691_v62, 4 }
 0x1ce   :  { %v1584_v29 = vpop.permute.xlu0 %1583  ;;  %1781 = vrot.lane.b32.xlu1 %v3491_v23, %s2640_s23 }
 0x1cf   :  { %v1599_v32 = vsel %vm1597_vm11, %v1582_v35, %v1584_v29 }
 0x1d0   :  { %v1615_v0 = vsel %vm3917_vm8, %v1599_v32, 0.0  ;;  %v1590_v21 = vpop.permute.xlu1 %1589  ;;  %v283_v32 = vadd.s32 4294967294, %v2772_v45 }
 0x1d1   :  { %v1720_v36 = vsel %vm3918_vm1, %v1615_v0, %v1704_v31 }
 0x1d2   :  { %v1592_v30 = vpop.permute.xlu0 %1591  ;;  %vm299_vm0 = vcmp.lt.s32.totalorder %v283_v32, 16 }
 0x1d3   :  { %v1603_v5 = vsel %vm1597_vm11, %v1590_v21, %v1592_v30 }
 0x1d4   :  { %v1619_v3 = vsel %vm2944_vm2, %v1603_v5, 0.0  ;;  %v1882_v22 = vpop.permute.xlu1 %1881 }
 0x1d5   :  { %v1724_v2 = vsel %vm3919_vm6, %v1619_v3, %v1708_v17  ;;  %vm3927_vm6 = vmmov %vm3921_vm5 }
 0x1d6   :  { %v1884_v44 = vpop.permute.xlu0 %1883 }
 0x1d7   :  { %v1898_v10 = vsel %vm3921_vm5, %v1882_v22, %v1884_v44  ;;  %vm1485_vm5 = vcmask 801792  }
 0x1d8   :  { %2335 = vmatprep.subr.mxu0 %v1898_v10  ;;  %v1890_v15 = vpop.permute.xlu1 %1889 }
 0x1da   :  { %v1892_v37 = vpop.permute.xlu0 %1891 }
 0x1db   :  { %v1902_v39 = vsel %vm3923_vm14, %v1890_v15, %v1892_v37 }
 0x1dc   :  { %2406 = vmatprep.subr.mxu1 %v1902_v39  ;;  %v1580_v59 = vpop.permute.xlu1 %1579 }
 0x1dd   :  { %v1598_v20 = vsel %vm1597_vm11, %v1580_v59, %v1582_v35 }
 0x1de   :  { %v1588_v19 = vpop.permute.xlu0 %1587  ;;  %v1614_v51 = vsel %vm3924_vm10, %v1598_v20, 0.0  ;;  %v3550_v20 = vadd.s32 4294967294, %v2770_v43 }
 0x1df   :  { %v1602_v6 = vsel %vm1597_vm11, %v1588_v19, %v1590_v21  ;;  %v1719_v26 = vsel %vm3925_vm9, %v1614_v51, %v1703_v57  ;;  %vm291_vm11 = vcmp.ge.s32.totalorder %v283_v32, 0  ;;  %vm1388_vm9 = vcmask 1031168  }
 0x1e0   :  { %v1618_v1 = vsel %vm2940_vm3, %v1602_v6, 0.0  ;;  %v1880_v53 = vpop.permute.xlu1 %1879  ;;  %vm3526_vm13 = vmand %vm291_vm11, %vm299_vm0  ;;  %v286_v57 = vadd.s32 4294967294, %v2776_v50 }
 0x1e1   :  { %v1723_v25 = vsel %vm3918_vm1, %v1618_v1, %v1707_v18  ;;  %v1897_v42 = vsel %vm3926_vm12, %v1880_v53, %v1882_v22  ;;  %vm3930_vm1 = vcmask 785408  }
 0x1e2   :  { %v1888_v52 = vpop.permute.xlu0 %1887  ;;  %2336 = vmatpush1.msra.mxu0 %v1897_v42  ;;  %vm3934_vm11 = vmmov %vm3930_vm1 }
 0x1e3   :  { %v1901_v33 = vsel %vm3927_vm6, %v1888_v52, %v1890_v15  ;;  %2337 = vmatprep.subr.mxu0 %v1720_v36  ;;  %v287_v36 = vadd.s32 4294967294, %v2782_v55  ;;  %vm3933_vm6 = vcmask 1043456  }
 0x1e4   :  { %2407 = vmatpush1.msra.mxu1 %v1901_v33  ;;  %v1373_v47 = vpop.permute.xlu1 %1372  ;;  %2338 = vmatpush1.msra.mxu0 %v1719_v26  ;;  %vm3935_vm0 = vmmov %vm3933_vm6 }
 0x1e5   :  { %2408 = vmatprep.subr.mxu1 %v1724_v2  ;;  %vm295_vm14 = vcmp.ge.s32.totalorder %v287_v36, 0  ;;  %vm303_vm10 = vcmp.lt.s32.totalorder %v287_v36, 16 }
 0x1e6   :  { %v1375_v24 = vpop.permute.xlu0 %1374  ;;  %2409 = vmatpush1.msra.mxu1 %v1723_v25  ;;  %vm3534_vm12 = vmand %vm295_vm14, %vm303_vm10  ;;  %vm1331_vm14 = vcmask 15360   ;;  %vm290_vm10 = vcmp.ge.s32.totalorder %v3550_v20, 0 }
 0x1e7   :  { %v1390_v10 = vsel %vm1388_vm9, %v1373_v47, %v1375_v24 }
 0x1e8   :  { %v1381_v11 = vpop.permute.xlu1 %1380  ;;  %v1406_v39 = vsel %vm3917_vm8, %v1390_v10, 0.0  ;;  %vm294_vm8 = vcmp.ge.s32.totalorder %v286_v57, 0 }
 0x1e9   :  { %v1422_v51 = vrot.slane %v1406_v39, 4 }
 0x1ea   :  { %v1383_v49 = vpop.permute.xlu0 %1382 }
 0x1eb   :  { %v1394_v59 = vsel %vm1388_vm9, %v1381_v11, %v1383_v49 }
 0x1ec   :  { %v1470_v34 = vpop.permute.xlu1 %1469  ;;  %v1410_v38 = vsel %vm2944_vm2, %v1394_v59, 0.0 }
 0x1ed   :  { %v1426_v42 = vrot.slane %v1410_v38, 4 }
 0x1ee   :  { %v1472_v35 = vpop.permute.xlu0 %1471 }
 0x1ef   :  { %v1487_v5 = vsel %vm1485_vm5, %v1470_v34, %v1472_v35 }
 0x1f0   :  { %v1478_v29 = vpop.permute.xlu1 %1477  ;;  %v1503_v2 = vsel %vm3526_vm13, %v1487_v5, 0.0 }
 0x1f2   :  { %v1480_v31 = vpop.permute.xlu0 %1479 }
 0x1f3   :  { %v1491_v27 = vsel %vm1485_vm5, %v1478_v29, %v1480_v31 }
 0x1f4   :  { %v1371_v40 = vpop.permute.xlu1 %1370  ;;  %v1507_v15 = vsel %vm3534_vm12, %v1491_v27, 0.0 }
 0x1f5   :  { %v1389_v25 = vsel %vm1388_vm9, %v1371_v40, %v1373_v47 }
 0x1f6   :  { %v1379_v0 = vpop.permute.xlu0 %1378 }
 0x1f7   :  { %v1393_v47 = vsel %vm1388_vm9, %v1379_v0, %v1381_v11  ;;  %vm3944_vm9 = vmmov %vm3935_vm0 }
 0x1f8   :  { %v1468_v21 = vpop.permute.xlu1 %1467 }
 0x1f9   :  { %v1486_v26 = vsel %vm1485_vm5, %v1468_v21, %v1470_v34 }
 0x1fa   :  { %v1476_v30 = vpop.permute.xlu0 %1475  ;;  %v1502_v16 = vsel %vm290_vm10, %v1486_v26, 0.0 }
 0x1fb   :  { %v1490_v24 = vsel %vm1485_vm5, %v1476_v30, %v1478_v29 }
 0x1fc   :  { %v1518_v3 = vpop.permute.xlu1 %1517 }
 0x1fe   :  { %v1520_v45 = vpop.permute.xlu0 %1519 }
 0x1ff   :  { %v1534_v22 = vsel %vm3930_vm1, %v1518_v3, %v1520_v45  ;;  %vm302_vm1 = vcmp.lt.s32.totalorder %v286_v57, 16 }
 0x200   :  { %v1550_v44 = vsel %vm3933_vm6, %v1503_v2, %v1534_v22  ;;  %v1526_v4 = vpop.permute.xlu1 %1525  ;;  %vm3936_vm6 = vmmov %vm3935_vm0 }
 0x201   :  { %2339 = vmatprep.subr.mxu0 %v1550_v44  ;;  %vm3564_vm2 = vmand %vm294_vm8, %vm302_vm1 }
 0x202   :  { %v1528_v8 = vpop.permute.xlu0 %1527  ;;  %v1506_v36 = vsel %vm3564_vm2, %v1490_v24, 0.0  ;;  %vm3941_vm8 = vmmov %vm3935_vm0 }
 0x203   :  { %v1538_v37 = vsel %vm3934_vm11, %v1526_v4, %v1528_v8  ;;  %vm3939_vm11 = vcmp.lt.s32.totalorder %v2903_v28, 16  ;;  %v1409_v28 = vsel %vm2940_vm3, %v1393_v47, 0.0  ;;  %vm3943_vm1 = vmmov %vm3935_vm0 }
 0x204   :  { %v1554_v62 = vsel %vm3935_vm0, %v1507_v15, %v1538_v37  ;;  %v1316_v19 = vpop.permute.xlu1 %1315  ;;  %v1405_v34 = vsel %vm3939_vm11, %v1389_v25, 0.0  ;;  %v1425_v45 = vrot.slane %v1409_v28, 4  ;;  %vm3945_vm3 = vmmov %vm3935_vm0  ;;  %vm1047_vm11 = vcmask 277504  }
 0x205   :  { %2410 = vmatprep.subr.mxu1 %v1554_v62  ;;  %v1421_v30 = vrot.slane %v1405_v34, 4 }
 0x206   :  { %v1318_v18 = vpop.permute.xlu0 %1317 }
 0x207   :  { %v1333_v6 = vsel %vm1331_vm14, %v1316_v19, %v1318_v18 }
 0x208   :  { %v1349_v50 = vsel %vm3526_vm13, %v1333_v6, 0.0  ;;  %v1324_v1 = vpop.permute.xlu1 %1323 }
 0x209   :  { %v1438_v43 = vsel %vm3936_vm6, %v1349_v50, %v1422_v51  ;;  %vm3940_vm6 = vcmask 785408  }
 0x20a   :  { %v1326_v53 = vpop.permute.xlu0 %1325  ;;  %vm3942_vm5 = vmmov %vm3940_vm6 }
 0x20b   :  { %v1337_v52 = vsel %vm1331_vm14, %v1324_v1, %v1326_v53 }
 0x20c   :  { %v1353_v49 = vsel %vm3534_vm12, %v1337_v52, 0.0  ;;  %v1516_v31 = vpop.permute.xlu1 %1515 }
 0x20d   :  { %v1442_v35 = vsel %vm3935_vm0, %v1353_v49, %v1426_v42  ;;  %v1533_v32 = vsel %vm3940_vm6, %v1516_v31, %v1518_v3  ;;  %vm3946_vm6 = vmmov %vm3935_vm0 }
 0x20e   :  { %v1524_v40 = vpop.permute.xlu0 %1523  ;;  %v1549_v21 = vsel %vm3941_vm8, %v1502_v16, %v1533_v32 }
 0x20f   :  { %v1537_v29 = vsel %vm3942_vm5, %v1524_v40, %v1526_v4  ;;  %2340 = vmatpush1.msra.mxu0 %v1549_v21 }
 0x210   :  { %v1553_v5 = vsel %vm3943_vm1, %v1506_v36, %v1537_v29  ;;  %v1314_v11 = vpop.permute.xlu1 %1313  ;;  %2341 = vmatprep.subr.mxu0 %v1438_v43  ;;  %vm3954_vm1 = vcmask 916480  }
 0x211   :  { %2411 = vmatpush1.msra.mxu1 %v1553_v5  ;;  %v1332_v0 = vsel %vm1331_vm14, %v1314_v11, %v1316_v19 }
 0x212   :  { %v1322_v3 = vpop.permute.xlu0 %1321  ;;  %2412 = vmatprep.subr.mxu1 %v1442_v35  ;;  %v1348_v2 = vsel %vm290_vm10, %v1332_v0, 0.0 }
 0x213   :  { %v1336_v22 = vsel %vm1331_vm14, %v1322_v3, %v1324_v1  ;;  %v1437_v27 = vsel %vm3944_vm9, %v1348_v2, %v1421_v30  ;;  %vm974_vm14 = vcmask 908288   ;;  %v385_v3 = vadd.s32 2, %v2799_v12  ;;  %vm3956_vm9 = vmmov %vm3935_vm0 }
 0x214   :  { %v1352_v13 = vsel %vm3564_vm2, %v1336_v22, 0.0  ;;  %v1032_v10 = vpop.permute.xlu1 %1031  ;;  %2342 = vmatpush1.msra.mxu0 %v1437_v27 }
 0x215   :  { %v1441_v44 = vsel %vm3945_vm3, %v1352_v13, %v1425_v45  ;;  %v3952_v13 = vld [vmem:[#allocation18_spill] sm:$0xff] }
 0x216   :  { %v1034_v4 = vpop.permute.xlu0 %1033  ;;  %2413 = vmatpush1.msra.mxu1 %v1441_v44  ;;  %vm3953_vm5 = vnez %v3952_v13  ;;  %v3979_v13 = vld [vmem:[#allocation15_spill] sm:$0xff] }
 0x217   :  { %v1049_v37 = vsel %vm1047_vm11, %v1032_v10, %v1034_v4  ;;  %v2263_v4 = vld [vmem:[#allocation3 + $0x88] sm:$0xff] }
 0x218   :  { %v1040_v8 = vpop.permute.xlu1 %1039  ;;  %v1065_v62 = vsel %vm3526_vm13, %v1049_v37, 0.0  ;;  %vm1274_vm13 = vcmask 261120  }
 0x219   :  { %v1081_v51 = vrot.slane %v1065_v62, 4  ;;  %v2258_v62 = vld [vmem:[#allocation3 + $0x40] sm:$0xff] }
 0x21a   :  { %v1042_v15 = vpop.permute.xlu0 %1041 }
 0x21b   :  { %v1053_v59 = vsel %vm1047_vm11, %v1040_v8, %v1042_v15 }
 0x21c   :  { %v1030_v39 = vpop.permute.xlu1 %1029  ;;  %v1069_v38 = vsel %vm3534_vm12, %v1053_v59, 0.0  ;;  %vm3949_vm12 = vmmov %vm3935_vm0 }
 0x21d   :  { %v1085_v17 = vrot.slane %v1069_v38, 4  ;;  %v1048_v55 = vsel %vm1047_vm11, %v1030_v39, %v1032_v10  ;;  %v3955_v10 = vld [vmem:[#allocation27_spill] sm:$0xff] }
 0x21e   :  { %v1038_v57 = vpop.permute.xlu0 %1037  ;;  %v1064_v24 = vsel %vm290_vm10, %v1048_v55, 0.0  ;;  %vm3950_vm10 = vcmask 924672  }
 0x21f   :  { %v1052_v49 = vsel %vm1047_vm11, %v1038_v57, %v1040_v8  ;;  %v1080_v35 = vrot.slane %v1064_v24, 4  ;;  %vm3951_vm8 = vmmov %vm3950_vm10  ;;  %v2262_v8 = vld [vmem:[#allocation3 + $0x80] sm:$0xff]  ;;  %vm425_vm11 = vcmp.ge.s32.totalorder %v417_v63, 0  ;;  %v2257_v24 = vld [vmem:[#allocation3 + $0x28] sm:$0xff] }
 0x220   :  { %v959_v19 = vpop.permute.xlu1 %958  ;;  %v1068_v31 = vsel %vm3564_vm2, %v1052_v49, 0.0  ;;  %vm401_vm2 = vcmp.lt.s32.totalorder %v385_v3, 16  ;;  %v866_v27 = vsel %vm3951_vm8, %v3230_v56, %v3232_v48  ;;  %v2259_v56 = vld [vmem:[#allocation3 + $0x48] sm:$0xff]  ;;  %v2256_v49 = vld [vmem:[#allocation3 + $0x20] sm:$0xff] }
 0x221   :  { %v1084_v21 = vrot.slane %v1068_v31, 4  ;;  %v3969_v31 = vld [vmem:[#allocation26_spill] sm:$0xff] }
 0x222   :  { %v961_v18 = vpop.permute.xlu0 %960 }
 0x223   :  { %v976_v6 = vsel %vm974_vm14, %v959_v19, %v961_v18 }
 0x224   :  { %v992_v50 = vsel %vm2845_vm7, %v976_v6, 0.0  ;;  %v967_v43 = vpop.permute.xlu1 %966  ;;  %vm3947_vm7 = vcmp.lt.s32.totalorder %v2830_v54, 16  ;;  %v867_v54 = vsel %vm3950_vm10, %v3232_v48, %v3240_v58  ;;  %v3959_v48 = vld [vmem:[#allocation17_spill] sm:$0xff]  ;;  %v2253_v6 = vld [vmem:[#allocation7] sm:$0xff]  ;;  %vm3967_vm10 = vcmask 490496  }
 0x225   :  { %v1097_v26 = vsel %vm3935_vm0, %v992_v50, %v1081_v51  ;;  %v883_v58 = vsel %vm3953_vm5, %v867_v54, 0.0  ;;  %v2255_v51 = vld [vmem:[#allocation3 + $0x8] sm:$0xff]  ;;  %v3977_v54 = vld [vmem:[#allocation14_spill] sm:$0xff] }
 0x226   :  { %v969_v1 = vpop.permute.xlu0 %968  ;;  %v3981_v50 = vld [vmem:[#allocation23_spill] sm:$0xff] }
 0x227   :  { %v980_v25 = vsel %vm974_vm14, %v967_v43, %v969_v1 }
 0x228   :  { %v996_v53 = vsel %vm2984_vm15, %v980_v25, 0.0  ;;  %v1259_v52 = vpop.permute.xlu1 %1258  ;;  %vm3948_vm15 = vmmov %vm3935_vm0  ;;  %vm3960_vm0 = vnez %v3959_v48  ;;  %v2264_v25 = vld [vmem:[#allocation3 + $0xa0] sm:$0xff]  ;;  %v1982_v48 = vld [vmem:[#allocation2 + $0x24] sm:$0xf] }
 0x229   :  { %v1101_v42 = vsel %vm3946_vm6, %v996_v53, %v1085_v17  ;;  %v3966_v53 = vld [vmem:[#allocation19_spill] sm:$0xff] }
 0x22a   :  { %v1261_v16 = vpop.permute.xlu0 %1260 }
 0x22b   :  { %v1276_v14 = vsel %vm1274_vm13, %v1259_v52, %v1261_v16  ;;  %v2260_v16 = vld [vmem:[#allocation3 + $0x60] sm:$0xff] }
 0x22c   :  { %2343 = vmatprep.subr.mxu0 %v1276_v14  ;;  %v1267_v34 = vpop.permute.xlu1 %1266 }
 0x22e   :  { %v1269_v47 = vpop.permute.xlu0 %1268 }
 0x22f   :  { %v1280_v9 = vsel %vm1274_vm13, %v1267_v34, %v1269_v47 }
 0x230   :  { %2414 = vmatprep.subr.mxu1 %v1280_v9  ;;  %v957_v32 = vpop.permute.xlu1 %956  ;;  %v3968_v9 = vld [vmem:[#allocation25_spill] sm:$0xff] }
 0x231   :  { %v975_v40 = vsel %vm974_vm14, %v957_v32, %v959_v19  ;;  %v3962_v19 = vld [vmem:[#allocation20_spill] sm:$0xff] }
 0x232   :  { %v965_v36 = vpop.permute.xlu0 %964  ;;  %v991_v20 = vsel %vm3947_vm7, %v975_v40, 0.0  ;;  %vm3963_vm7 = vcmask 244736   ;;  %v3970_v32 = vld [vmem:[#allocation28_spill] sm:$0xff] }
 0x233   :  { %v979_v29 = vsel %vm974_vm14, %v965_v36, %v967_v43  ;;  %v1096_v30 = vsel %vm3948_vm15, %v991_v20, %v1080_v35  ;;  %vm433_vm14 = vcmp.lt.s32.totalorder %v417_v63, 16  ;;  %vm2306_vm15 = vcmask 826368   ;;  %v2265_v43 = vld [vmem:[#allocation3 + $0xa8] sm:$0xff]  ;;  %v2561_v36 = vld [vmem:[#allocation2 + $0x8] sm:$0xff]  ;;  %v946_v20 = vld [vmem:[#allocation2 + $0x24] sm:$0xf] }
 0x234   :  { %v995_v28 = vsel %vm2973_vm4, %v979_v29, 0.0  ;;  %v1257_v33 = vpop.permute.xlu1 %1256  ;;  %vm393_vm4 = vcmp.ge.s32.totalorder %v385_v3, 0  ;;  %v953_v35 = vcombine.high %v3366_v41, %v3366_v41  ;;  %v955_v40 = vcombine.high %v3970_v32, %v3970_v32  ;;  %v2562_v29 = vld [vmem:[#allocation2 + $0x18] sm:$0xff]  ;;  %v1003_v41 = vld [vmem:[#allocation2 + $0x20] sm:$0xf] }
 0x235   :  { %v1100_v5 = vsel %vm3949_vm12, %v995_v28, %v1084_v21  ;;  %v1275_v11 = vsel %vm1274_vm13, %v1257_v33, %v1259_v52  ;;  %vm3637_vm3 = vmand %vm393_vm4, %vm401_vm2  ;;  %v2261_v52 = vld [vmem:[#allocation3 + $0x68] sm:$0xff]  ;;  %v1932_v21 = vcombine.high %v2561_v36, %v2561_v36  ;;  %v3971_v28 = vld [vmem:[#allocation24_spill] sm:$0xff]  ;;  %vm3972_vm4 = vcmask 785408  }
 0x236   :  { %v1265_v0 = vpop.permute.xlu0 %1264  ;;  %2344 = vmatpush1.msra.mxu0 %v1275_v11  ;;  %vm3651_vm12 = vmand %vm425_vm11, %vm433_vm14  ;;  %v3973_v33 = vld [vmem:[#allocation13_spill] sm:$0xff] }
 0x237   :  { %v1279_v45 = vsel %vm1274_vm13, %v1265_v0, %v1267_v34  ;;  %2345 = vmatprep.subr.mxu0 %v1097_v26  ;;  %vm3961_vm13 = vmmov %vm3954_vm1  ;;  %v2254_v26 = vld [vmem:[#allocation3] sm:$0xff]  ;;  %v2560_v34 = vld [vmem:[#allocation2 + $0x24] sm:$0xf] }
 0x238   :  { %2415 = vmatpush1.msra.mxu1 %v1279_v45  ;;  %v902_v2 = vpop.permute.xlu1 %901  ;;  %2346 = vmatpush1.msra.mxu0 %v1096_v30  ;;  %v890_v47 = vcombine.low %v2560_v34, %v2560_v34  ;;  %v1934_v30 = vcombine.high %v2562_v29, %v2562_v29  ;;  %vm3974_vm2 = vmmov %vm3946_vm6 }
 0x239   :  { %2416 = vmatprep.subr.mxu1 %v1101_v42  ;;  %2347 = vmatprep.subr.mxu0 %v3264_v46  ;;  %v882_v46 = vsel %vm3960_vm0, %v866_v27, 0.0  ;;  %vm3975_vm8 = vmmov %vm3972_vm4 }
 0x23a   :  { %v904_v22 = vpop.permute.xlu0 %903  ;;  %2417 = vmatpush1.msra.mxu1 %v1100_v5  ;;  %2348 = vmatpush1.msra.mxu0 %v3955_v10  ;;  %v1224_v5 = vsel %vm3972_vm4, %v3971_v28, %v3206_v60  ;;  %vm3976_vm5 = vmmov %vm3974_vm2  ;;  %v3980_v10 = vld [vmem:[#allocation16_spill] sm:$0xff] }
 0x23b   :  { %v915_v44 = vsel %vm3954_vm1, %v902_v2, %v904_v22  ;;  %2349 = vmatprep.subr.mxu0 %v2263_v4  ;;  %v1241_v11 = vsel %vm3974_vm2, %v3973_v33, %v1224_v5  ;;  %vm3978_vm1 = vmmov %vm3974_vm2 }
 0x23c   :  { %v931_v12 = vsel %vm3956_vm9, %v883_v58, %v915_v44  ;;  %v900_v15 = vpop.permute.xlu1 %899  ;;  %2350 = vmatpush1.msra.mxu0 %v2262_v8  ;;  %v1360_v58 = vld [vmem:[#allocation2 + $0x24] sm:$0xf]  ;;  %vm3983_vm9 = vcmask 523264   ;;  %vm3987_vm14 = vmmov %vm3978_vm1 }
 0x23d   :  { %2418 = vmatprep.subr.mxu1 %v931_v12  ;;  %v914_v39 = vsel %vm3961_vm13, %v900_v15, %v902_v2  ;;  %2351 = vmatprep.subr.mxu0 %v2259_v56  ;;  %v1626_v15 = vld [vmem:[#allocation2 + $0x20] sm:$0xf]  ;;  %vm3986_vm11 = vmmov %vm3983_vm9 }
 0x23e   :  { %v1159_v57 = vpop.permute.xlu0 %1158  ;;  %v930_v59 = vsel %vm3946_vm6, %v882_v46, %v914_v39  ;;  %2352 = vmatpush1.msra.mxu0 %v2258_v62  ;;  %v2563_v46 = vld [vmem:[#allocation2 + $0x1c] sm:$0xff]  ;;  %vm3988_vm0 = vmmov %vm3978_vm1 }
 0x23f   :  { %v1168_v18 = vsel %vm3963_vm7, %v3962_v19, %v1159_v57  ;;  %2353 = vmatprep.subr.mxu0 %v2255_v51  ;;  %2419 = vmatpush1.msra.mxu1 %v930_v59  ;;  %v1466_v39 = vcombine.high %v2563_v46, %v2563_v46  ;;  %v2564_v57 = vld [vmem:[#allocation2 + $0xc] sm:$0xff]  ;;  %v1457_v59 = vld [vmem:[#allocation2 + $0x24] sm:$0xf] }
 0x240   :  { %v1184_v38 = vsel %vm3637_vm3, %v1168_v18, 0.0  ;;  %v1782_v17 = vpop.permute.xlu1 %1781  ;;  %2354 = vmatpush1.msra.mxu0 %v2254_v26  ;;  %2420 = vmatprep.subr.mxu1 %v2265_v43  ;;  %v1464_v62 = vcombine.high %v2564_v57, %v2564_v57  ;;  %v1569_v19 = vld [vmem:[#allocation2 + $0x24] sm:$0xf]  ;;  %v1925_v18 = vld [vmem:[#allocation2 + $0x20] sm:$0xf]  ;;  %v3982_v26 = vld [vmem:[#allocation21_spill] sm:$0xff] }
 0x241   :  { %v1204_v1 = vrot.slane %v1184_v38, 4  ;;  %v1791_v42 = vsel %vm3967_vm10, %v3966_v53, %v1782_v17  ;;  %2421 = vmatpush1.msra.mxu1 %v2264_v25  ;;  %2490 = vmatmul.mubr.msk.f32.vlgmr.msra.gmra.mxu0 %vm2306_vm15, %v2253_v6  ;;  %v2079_v51 = vld [vmem:[#allocation2 + $0x24] sm:$0xf]  ;;  %v1847_v43 = vsel %vm3983_vm9, %v3982_v26, %v3981_v50  ;;  %vm3984_vm3 = vmmov %vm3978_vm1  ;;  %v3985_v25 = vld [vmem:[#allocation22_spill] sm:$0xff] }
 0x242   :  { %v1807_v55 = vsel %vm3651_vm12, %v1791_v42, 0.0  ;;  %2422 = vmatprep.subr.mxu1 %v2261_v52  ;;  %v2135_v38 = vcombine.low %v2079_v51, %v2079_v51  ;;  %v1864_v17 = vsel %vm3984_vm3, %v3973_v33, %v1847_v43 }
 0x243   :  { %1219 = vrot.lane.b32.xlu0 %v1204_v1, %s2644_s27  ;;  %v1827_v14 = vrot.slane %v1807_v55, 4  ;;  %2423 = vmatpush1.msra.mxu1 %v2260_v16  ;;  %v2190_v1 = vld [vmem:[#allocation2 + $0x24] sm:$0xf] }
 0x244   :  { %2424 = vmatprep.subr.mxu1 %v2257_v24 }
 0x245   :  { %1842 = vrot.lane.b32.xlu1 %v1827_v14, %s2643_s26  ;;  %2425 = vmatpush1.msra.mxu1 %v2256_v49 }
 0x246   :  { %2493 = vmatmul.mubr.msk.f32.vlgmr.msra.gmra.mxu1 %vm2306_vm15, %v2253_v6  ;;  %v1514_v6 = vcombine.low %v1457_v59, %v1457_v59 }
 0x247   :  { %897 = vrot.lane.b32.xlu0 %v3968_v9, %s2647_s29 }
 0x249   :  { %905 = vrot.lane.b32.xlu1 %v3969_v31, %s2647_s29 }
 0x24b   :  { %907 = vrot.lane.b32.xlu0 %v890_v47, %s2647_s29 }
 0x24d   :  { %962 = vrot.lane.b32.xlu1 %v953_v35, %s2656_s10 }
 0x24f   :  { %970 = vrot.lane.b32.xlu0 %v955_v40, %s2656_s10 }
 0x251   :  { %972 = vrot.lane.b32.xlu1 %v946_v20, %s2656_s10 }
 0x253   :  { %1035 = vrot.lane.b32.xlu0 %v1932_v21, %s2655_s9 }
 0x255   :  { %1043 = vrot.lane.b32.xlu1 %v1934_v30, %s2655_s9 }
 0x257   :  { %1045 = vrot.lane.b32.xlu0 %v1003_v41, %s2655_s9 }
 0x259   :  { %1262 = vrot.lane.b32.xlu1 %v1241_v11, %s2657_s11 }
 0x2b5   :  { %v1220_v0 = vpop.permute.xlu0 %1219 }
 0x2b6   :  { %v1228_v3 = vsel %vm3975_vm8, %v3204_v61, %v1220_v0  ;;  %v1246_v45 = vsel %vm3976_vm5, %v3484_v7, %v1220_v0  ;;  %v1303_v61 = vld [vmem:[#allocation2 + $0x20] sm:$0xf] }
 0x2b7   :  { %1272 = vrot.lane.b32.xlu1 %v1246_v45, %s2657_s11  ;;  %v1245_v60 = vsel %vm3978_vm1, %v3977_v54, %v1228_v3  ;;  %v3692_v2 = vpop.permute.xlu1 %1842 }
 0x2b8   :  { %1270 = vrot.lane.b32.xlu0 %v1245_v60, %s2657_s11  ;;  %v1851_v53 = vsel %vm3986_vm11, %v3985_v25, %v3692_v2  ;;  %v1869_v42 = vsel %vm3987_vm14, %v3491_v23, %v3692_v2 }
 0x2b9   :  { %v898_v63 = vpop.permute.xlu0 %897  ;;  %v1868_v52 = vsel %vm3988_vm0, %v3977_v54, %v1851_v53 }
 0x2bb   :  { %1327 = vrot.lane.b32.xlu1 %v1934_v30, %s2654_s8  ;;  %v906_v22 = vpop.permute.xlu1 %905 }
 0x2bc   :  { %1319 = vrot.lane.b32.xlu0 %v1932_v21, %s2654_s8 }
 0x2bd   :  { %v908_v27 = vpop.permute.xlu0 %907 }
 0x2bf   :  { %1376 = vrot.lane.b32.xlu1 %v3979_v13, %s2652_s6  ;;  %v963_v7 = vpop.permute.xlu1 %962 }
 0x2c0   :  { %1329 = vrot.lane.b32.xlu0 %v1303_v61, %s2654_s8 }
 0x2c1   :  { %v971_v44 = vpop.permute.xlu0 %970 }
 0x2c3   :  { %1386 = vrot.lane.b32.xlu1 %v1360_v58, %s2652_s6  ;;  %v973_v4 = vpop.permute.xlu1 %972 }
 0x2c4   :  { %1384 = vrot.lane.b32.xlu0 %v3980_v10, %s2652_s6 }
 0x2c5   :  { %v1036_v12 = vpop.permute.xlu0 %1035 }
 0x2c7   :  { %1666 = vrot.lane.b32.xlu1 %v1934_v30, %s2649_s3  ;;  %v1044_v8 = vpop.permute.xlu1 %1043 }
 0x2c8   :  { %1658 = vrot.lane.b32.xlu0 %v1932_v21, %s2649_s3 }
 0x2c9   :  { %v1046_v37 = vpop.permute.xlu0 %1045 }
 0x2cb   :  { %1998 = vrot.lane.b32.xlu1 %v3979_v13, %s2648_s30  ;;  %v1263_v56 = vpop.permute.xlu1 %1262 }
 0x2cc   :  { %1668 = vrot.lane.b32.xlu0 %v1626_v15, %s2649_s3 }
 0x2cf   :  { %2008 = vrot.lane.b32.xlu1 %v1982_v48, %s2648_s30 }
 0x2d0   :  { %2006 = vrot.lane.b32.xlu0 %v3980_v10, %s2648_s30 }
 0x2d3   :  { %1481 = vrot.lane.b32.xlu1 %v1466_v39, %s2653_s7 }
 0x2d4   :  { %1473 = vrot.lane.b32.xlu0 %v1464_v62, %s2653_s7 }
 0x2d7   :  { %1585 = vrot.lane.b32.xlu1 %v3979_v13, %s2651_s5 }
 0x2d8   :  { %1483 = vrot.lane.b32.xlu0 %v1457_v59, %s2653_s7 }
 0x2db   :  { %1595 = vrot.lane.b32.xlu1 %v1569_v19, %s2651_s5 }
 0x2dc   :  { %1593 = vrot.lane.b32.xlu0 %v3980_v10, %s2651_s5 }
 0x2df   :  { %1949 = vrot.lane.b32.xlu1 %v1934_v30, %s2650_s4 }
 0x2e0   :  { %1941 = vrot.lane.b32.xlu0 %v1932_v21, %s2650_s4 }
 0x2e3   :  { %2095 = vrot.lane.b32.xlu1 %v1464_v62, %s2649_s3 }
 0x2e4   :  { %1951 = vrot.lane.b32.xlu0 %v1925_v18, %s2650_s4 }
 0x2e7   :  { %2105 = vrot.lane.b32.xlu1 %v2079_v51, %s2649_s3 }
 0x2e8   :  { %2103 = vrot.lane.b32.xlu0 %v1466_v39, %s2649_s3 }
 0x2eb   :  { %1529 = vrot.lane.b32.xlu1 %v2563_v46, %s2644_s27 }
 0x2ec   :  { %1521 = vrot.lane.b32.xlu0 %v2564_v57, %s2644_s27 }
 0x2ef   :  { %2142 = vrot.lane.b32.xlu1 %v2564_v57, %s2643_s26 }
 0x2f0   :  { %1531 = vrot.lane.b32.xlu0 %v1514_v6, %s2644_s27 }
 0x2f3   :  { %2152 = vrot.lane.b32.xlu1 %v2135_v38, %s2643_s26 }
 0x2f4   :  { %2150 = vrot.lane.b32.xlu0 %v2563_v46, %s2643_s26 }
 0x2f7   :  { %2214 = vrot.lane.b32.xlu1 %v3980_v10, %s2640_s23 }
 0x2f8   :  { %2206 = vrot.lane.b32.xlu0 %v3979_v13, %s2640_s23 }
 0x2fb   :  { %1885 = vrot.lane.b32.xlu1 %v1864_v17, %s2643_s26 }
 0x2fc   :  { %2216 = vrot.lane.b32.xlu0 %v2190_v1, %s2640_s23 }
 0x2ff   :  { %1895 = vrot.lane.b32.xlu1 %v1869_v42, %s2643_s26 }
 0x300   :  { %1893 = vrot.lane.b32.xlu0 %v1868_v52, %s2643_s26 }
 0x301   :  { %v2389_v55 = vpop.f32.mrf.mxu0 }
 0x302   :  { %2465 = vst [vmem:[#allocation9] sm:$0xff] %v2389_v55 }
 0x303   :  { %v2391_v16 = vpop.f32.mrf.mxu0 }
 0x304   :  { %2466 = vst [vmem:[#allocation9 + $0x8] sm:$0xff] %v2391_v16 }
 0x306   :  { %v2460_v14 = vpop.f32.mrf.mxu1 }
 0x307   :  { %2468 = vst [vmem:[#allocation9 + $0x10] sm:$0xff] %v2460_v14 }
 0x308   :  { %v2462_v24 = vpop.f32.mrf.mxu1 }
 0x309   :  { %2469 = vst [vmem:[#allocation9 + $0x18] sm:$0xff] %v2462_v24 }
 0x30a   :  { %2616 = shalt.err (!%p2613_p0)
}
 0x30b   :  { %s2659_s15 = smov 256  }
 0x30c   :  { %2481 = dma.vmem_to_hbm [thread:$0]  %s2476_s13, 512, %s3757_s2, [#allocation6], %s2659_s15, %s2659_s15, %s2637_s1  }
 0x329   :  { %v1273_v23 = vpop.permute.xlu1 %1272 }
 0x32a   :  { %v1271_v49 = vpop.permute.xlu0 %1270 }
 0x32d   :  { %v1328_v34 = vpop.permute.xlu1 %1327 }
 0x32e   :  { %v1320_v47 = vpop.permute.xlu0 %1319 }
 0x331   :  { %v1377_v9 = vpop.permute.xlu1 %1376 }
 0x332   :  { %v1330_v35 = vpop.permute.xlu0 %1329 }
 0x335   :  { %v1387_v31 = vpop.permute.xlu1 %1386 }
 0x336   :  { %v1385_v32 = vpop.permute.xlu0 %1384 }
 0x339   :  { %v1667_v40 = vpop.permute.xlu1 %1666 }
 0x33a   :  { %v1659_v36 = vpop.permute.xlu0 %1658 }
 0x33d   :  { %v1999_v21 = vpop.permute.xlu1 %1998 }
 0x33e   :  { %v1669_v20 = vpop.permute.xlu0 %1668 }
 0x341   :  { %v2009_v29 = vpop.permute.xlu1 %2008 }
 0x342   :  { %v2007_v30 = vpop.permute.xlu0 %2006 }
 0x345   :  { %v1482_v41 = vpop.permute.xlu1 %1481 }
 0x346   :  { %v1474_v28 = vpop.permute.xlu0 %1473 }
 0x349   :  { %v1586_v5 = vpop.permute.xlu1 %1585 }
 0x34a   :  { %v1484_v33 = vpop.permute.xlu0 %1483 }
 0x34d   :  { %v1596_v11 = vpop.permute.xlu1 %1595 }
 0x34e   :  { %v1594_v0 = vpop.permute.xlu0 %1593 }
 0x351   :  { %v1950_v3 = vpop.permute.xlu1 %1949 }
 0x352   :  { %v1942_v45 = vpop.permute.xlu0 %1941 }
 0x355   :  { %v2096_v54 = vpop.permute.xlu1 %2095 }
 0x356   :  { %v1952_v60 = vpop.permute.xlu0 %1951 }
 0x359   :  { %v2106_v2 = vpop.permute.xlu1 %2105 }
 0x35a   :  { %v2104_v63 = vpop.permute.xlu0 %2103 }
 0x35d   :  { %v1530_v22 = vpop.permute.xlu1 %1529 }
 0x35e   :  { %v1522_v27 = vpop.permute.xlu0 %1521 }
 0x361   :  { %v2143_v61 = vpop.permute.xlu1 %2142 }
 0x362   :  { %v1532_v13 = vpop.permute.xlu0 %1531 }
 0x365   :  { %v2153_v7 = vpop.permute.xlu1 %2152 }
 0x366   :  { %v2151_v58 = vpop.permute.xlu0 %2150 }
 0x369   :  { %v2215_v44 = vpop.permute.xlu1 %2214 }
 0x36a   :  { %v2207_v10 = vpop.permute.xlu0 %2206 }
 0x36d   :  { %v1886_v4 = vpop.permute.xlu1 %1885 }
 0x36e   :  { %v2217_v12 = vpop.permute.xlu0 %2216 }
 0x371   :  { %v1896_v8 = vpop.permute.xlu1 %1895 }
 0x372   :  { %v1894_v15 = vpop.permute.xlu0 %1893 }
 0x373   :  { %2629 = dma.done.wait [#allocation6], 512  }
 0x374   :  { %2630 = vsyncadd [#allocation6], 4294966784 }
 0x375   :  { %2485 = vsyncpa [#allocation5], 1 }
 0x376   :  { %2486 = vsyncpa [#allocation8], 1 }
 0x377   :  { %2487 = vsyncpa [#allocation6], 1 }

</bundles_post_ra>
